<compile_context>
chip_gen: v5e
topology: v5e:2x2
jax: 0.10.0
libtpu: 0.0.40
codegen_flags: <defaults>
</compile_context>

<pallas_src>
import functools

import jax
import jax.numpy as jnp
from jax.experimental import pallas as pl
from jax.experimental.pallas import tpu as pltpu


HP = 128  # per-gate lane padding (one full vreg lane block per gate)


def gru_step_kernel(x_ref, wih_ref, whh_ref, bgi_ref, bhn_ref,
                    wout_ref, bout_ref, o_ref, gi_ref, h_ref, *, seq_len):
    """One (batch block, time tile) grid step of the GRU + final Linear.

    Grid: (batch blocks ["parallel"], time tiles ["arbitrary"]).

    x_ref:    (T_tile, B_blk, 2E) current time tile of the current batch block
    wih_ref:  (2E, 3*Hp)  input->gates weights, each gate in its own 128-lane block
    whh_ref:  (Hp, 3*Hp)  hidden->gates weights (padded rows/cols are zero)
    bgi_ref:  (1, 3*Hp)   folded bias: [b_ih_r+b_hh_r, b_ih_z+b_hh_z, b_ih_n]
    bhn_ref:  (1, Hp)     b_hh_n (kept separate: it is scaled by r)
    wout_ref: (Hp, Vp)    output Linear weight (padded)
    bout_ref: (1, Vp)     output Linear bias (padded)
    o_ref:    (B_blk, Vp) lane-dense logits tile (written on the last time tile)
    gi_ref:   (T_tile*B_blk, 3*Hp) VMEM scratch for the per-tile input projection
    h_ref:    (B_blk, Hp) VMEM scratch carrying h across time tiles
    """
    T_tile, B_blk, F = x_ref.shape
    Hp = whh_ref.shape[0]
    t_idx = pl.program_id(1)
    n_t = pl.num_programs(1)

    # New batch block: reset the carried hidden state.
    @pl.when(t_idx == 0)
    def _():
        h_ref[...] = jnp.zeros_like(h_ref)

    # Hoisted per-tile input projection: ONE MXU matmul with the r/z/(part of n)
    # biases folded in.  Off the serial recurrence path; the BlockSpec pipeline
    # overlaps the DMA of the next x time tile with this grid step's compute.
    x_flat = x_ref[...].reshape(T_tile * B_blk, F)
    gi_ref[...] = (jnp.dot(x_flat, wih_ref[...],
                           preferred_element_type=jnp.float32)
                   + bgi_ref[...])

    # Hoist the b_hh_n broadcast out of the step loop (JAX does not CSE it).
    bhn = jnp.broadcast_to(bhn_ref[...], (B_blk, Hp))

    h = h_ref[...]
    masked_tail = (seq_len % T_tile) != 0  # static: only traced for ragged T

    # Static unroll over the small time tile; the grid handles long sequences.
    for t in range(T_tile):
        gi = gi_ref[t * B_blk:(t + 1) * B_blk, :]   # sublane-aligned static slice

        # Gate-wise recurrent dots fed straight from the ref (no whole-w_hh
        # value live across the unrolled loop).  r/z lanes first so the EUP
        # sigmoids overlap the in-flight n-gate matmul.
        gh_rz = jnp.dot(h, whh_ref[:, :2 * Hp], preferred_element_type=jnp.float32)
        r = jax.nn.sigmoid(gi[:, :Hp] + gh_rz[:, :Hp])          # biases folded in gi
        z = jax.nn.sigmoid(gi[:, Hp:2 * Hp] + gh_rz[:, Hp:])
        gh_n = jnp.dot(h, whh_ref[:, 2 * Hp:], preferred_element_type=jnp.float32)
        n = jnp.tanh(gi[:, 2 * Hp:] + r * (gh_n + bhn))
        h_new = n + z * (h - n)                                  # == (1-z)*n + z*h

        if masked_tail:                                           # ragged tail only
            valid = (t_idx * T_tile + t) < seq_len
            h_new = jnp.where(valid, h_new, h)
        h = h_new

    h_ref[...] = h                                               # carry to next tile

    # Final Linear on the last time tile: lane-dense (B_blk, Vp) store.
    @pl.when(t_idx == n_t - 1)
    def _():
        o_ref[...] = (jnp.dot(h, wout_ref[...],
                              preferred_element_type=jnp.float32)
                      + bout_ref[...]).astype(o_ref.dtype)


def _pad_gate_cols(w, h, hp):
    """(in, 3h) -> (in, 3*hp) with gate g occupying cols [g*hp, g*hp + h)."""
    parts = []
    for g in range(3):
        wg = w[:, g * h:(g + 1) * h]
        parts.append(jnp.pad(wg, ((0, 0), (0, hp - h))))
    return jnp.concatenate(parts, axis=1)


def pack_params(params):
    """Repack torch-layout (transposed) GRU params into the lane-aligned layout.

    NOTE: correctness of the lane padding relies on every padded column/row of
    w_hh, b_gi, b_hn and w_out being exactly zero and on h starting at zero
    (padded lanes then provably stay 0 through the recurrence).
    """
    w_ih, w_hh = params["w_ih"], params["w_hh"]      # (2E, 3H), (H, 3H)
    b_ih, b_hh = params["b_ih"], params["b_hh"]      # (1, 3H)
    w_out, b_out = params["w_out"], params["b_out"]  # (H, V), (1, V)

    H = w_hh.shape[0]
    V = w_out.shape[1]
    assert H <= HP, "H > 128 would need per-gate tiling"  # TODO(synk): tile gates for H > 128
    Hp = HP
    Vp = pl.cdiv(V, 128) * 128

    w_ih_p = _pad_gate_cols(w_ih, H, Hp)                                   # (2E, 3Hp)
    w_hh_p = jnp.pad(_pad_gate_cols(w_hh, H, Hp), ((0, Hp - H), (0, 0)))   # (Hp, 3Hp)

    b_r = b_ih[:, 0 * H:1 * H] + b_hh[:, 0 * H:1 * H]
    b_z = b_ih[:, 1 * H:2 * H] + b_hh[:, 1 * H:2 * H]
    b_n = b_ih[:, 2 * H:3 * H]
    b_gi = jnp.concatenate(
        [jnp.pad(b, ((0, 0), (0, Hp - H))) for b in (b_r, b_z, b_n)], axis=1)  # (1, 3Hp)
    b_hn = jnp.pad(b_hh[:, 2 * H:3 * H], ((0, 0), (0, Hp - H)))                # (1, Hp)

    w_out_p = jnp.pad(w_out, ((0, Hp - H), (0, Vp - V)))                       # (Hp, Vp)
    b_out_p = jnp.pad(b_out, ((0, 0), (0, Vp - V)))                            # (1, Vp)

    return {"w_ih": w_ih_p, "w_hh": w_hh_p, "b_gi": b_gi, "b_hn": b_hn,
            "w_out": w_out_p, "b_out": b_out_p, "H": H, "V": V,
            "Hp": Hp, "Vp": Vp}


def gru_model_forward(input1, input2, params, *, t_tile=8, b_block=128):
    """Mirrors GRUModel.forward (softmax is defined but unused in the torch forward)."""
    emb1 = params["embedding1"][input1]              # (B, T, E)  gather glue in JAX
    emb2 = params["embedding2"][input2]              # (B, T, E)
    x = jnp.concatenate([emb1, emb2], axis=2)        # (B, T, 2E)
    B, T, F = x.shape

    pk = pack_params(params)
    Hp, Vp, V = pk["Hp"], pk["Vp"], pk["V"]

    # Tile sizes: small compile-time time tile (grid handles long T); batch
    # padded to sublanes and blocked so a "parallel" grid axis can use both
    # v7x TensorCores (and pack up to 128 rows/step through the MXU).
    T_tile = max(1, min(t_tile, T))
    Tp = pl.cdiv(T, T_tile) * T_tile
    Bp8 = pl.cdiv(B, 8) * 8
    B_blk = min(b_block, Bp8)
    Bp = pl.cdiv(Bp8, B_blk) * B_blk

    # time-major; pad batch to the block size and time to a tile multiple.
    x_tm = jnp.transpose(x, (1, 0, 2)).astype(jnp.float32)        # (T, B, 2E)
    x_tm = jnp.pad(x_tm, ((0, Tp - T), (0, Bp - B), (0, 0)))       # (Tp, Bp, 2E)

    grid = (Bp // B_blk, Tp // T_tile)

    # Explicit scoped-VMEM budget: weights + double-buffered x tile + gi/h
    # scratch + double-buffered output, with headroom (default scoped limit is
    # 16/32 MiB and would OOM first once tiles grow).
    f32 = 4
    weight_bytes = f32 * (F * 3 * Hp + Hp * 3 * Hp + 3 * Hp + Hp + Hp * Vp + Vp)
    tile_bytes = (2 * f32 * T_tile * B_blk * F            # x tile (double buffered)
                  + f32 * T_tile * B_blk * 3 * Hp         # gi scratch
                  + f32 * B_blk * Hp                      # carried h
                  + 2 * f32 * B_blk * Vp)                 # output tile
    vmem_limit = int(min(64 * 1024 * 1024,
                         max(32 * 1024 * 1024,
                             2 * (weight_bytes + tile_bytes) + (4 << 20))))

    const = lambda b, t: (0, 0)
    kernel = functools.partial(gru_step_kernel, seq_len=T)

    out = pl.pallas_call(
        kernel,
        out_shape=jax.ShapeDtypeStruct((Bp, Vp), jnp.float32),
        grid=grid,
        in_specs=[
            pl.BlockSpec((T_tile, B_blk, F), lambda b, t: (t, b, 0)),  # x stream
            pl.BlockSpec((F, 3 * Hp), const),                          # w_ih
            pl.BlockSpec((Hp, 3 * Hp), const),                         # w_hh
            pl.BlockSpec((1, 3 * Hp), const),                          # b_gi
            pl.BlockSpec((1, Hp), const),                              # b_hn
            pl.BlockSpec((Hp, Vp), const),                             # w_out
            pl.BlockSpec((1, Vp), const),                              # b_out
        ],
        out_specs=pl.BlockSpec((B_blk, Vp), lambda b, t: (b, 0)),
        scratch_shapes=[
            pltpu.VMEM((T_tile * B_blk, 3 * Hp), jnp.float32),  # per-tile gi
            pltpu.VMEM((B_blk, Hp), jnp.float32),               # carried h
        ],
        compiler_params=pltpu.CompilerParams(
            dimension_semantics=("parallel", "arbitrary"),
            vmem_limit_bytes=vmem_limit,
        ),
    )(x_tm, pk["w_ih"], pk["w_hh"], pk["b_gi"], pk["b_hn"],
      pk["w_out"], pk["b_out"])

    return out[:B, :V]


def init_params(key, vocab_size1, vocab_size2, embedding_dim, hidden_units):
    ks = jax.random.split(key, 9)
    E, H = embedding_dim, hidden_units
    s = 1.0 / jnp.sqrt(H)
    params = {
        # nn.Embedding default init ~ N(0, 1)
        "embedding1": jax.random.normal(ks[0], (vocab_size1, E), jnp.float32),
        "embedding2": jax.random.normal(ks[1], (vocab_size2, E), jnp.float32),
        # nn.GRU weights (stored transposed: (in, 3H) / (H, 3H)), gate order [r, z, n]
        "w_ih": jax.random.uniform(ks[2], (2 * E, 3 * H), jnp.float32, -s, s),
        "w_hh": jax.random.uniform(ks[3], (H, 3 * H), jnp.float32, -s, s),
        "b_ih": jax.random.uniform(ks[4], (1, 3 * H), jnp.float32, -s, s),
        "b_hh": jax.random.uniform(ks[5], (1, 3 * H), jnp.float32, -s, s),
        # nn.Linear(hidden_units, vocab_size1), stored transposed (H, V)
        "w_out": jax.random.uniform(ks[6], (H, vocab_size1), jnp.float32, -s, s),
        "b_out": jax.random.uniform(ks[7], (1, vocab_size1), jnp.float32, -s, s),
    }
    return params


def reference_forward(input1, input2, params):
    """Pure-JAX reference matching torch GRU semantics (for correctness check)."""
    emb1 = params["embedding1"][input1]
    emb2 = params["embedding2"][input2]
    x = jnp.concatenate([emb1, emb2], axis=2)  # (B, T, 2E)
    B, T, _ = x.shape
    H = params["w_hh"].shape[0]
    h = jnp.zeros((B, H), jnp.float32)
    for t in range(T):
        gi = x[:, t, :] @ params["w_ih"] + params["b_ih"]
        gh = h @ params["w_hh"] + params["b_hh"]
        i_r, i_z, i_n = gi[:, :H], gi[:, H:2 * H], gi[:, 2 * H:]
        h_r, h_z, h_n = gh[:, :H], gh[:, H:2 * H], gh[:, 2 * H:]
        r = jax.nn.sigmoid(i_r + h_r)
        z = jax.nn.sigmoid(i_z + h_z)
        n = jnp.tanh(i_n + r * h_n)
        h = (1.0 - z) * n + z * h
    return h @ params["w_out"] + params["b_out"]


if __name__ == "__main__":
    vocab_size1, vocab_size2 = 16, 12
    embedding_dim, hidden_units = 8, 32
    batch, seq = 2, 8

    key = jax.random.PRNGKey(0)
    kp, k1, k2 = jax.random.split(key, 3)
    params = init_params(kp, vocab_size1, vocab_size2, embedding_dim, hidden_units)

    input1 = jax.random.randint(k1, (batch, seq), 0, vocab_size1, dtype=jnp.int32)
    input2 = jax.random.randint(k2, (batch, seq), 0, vocab_size2, dtype=jnp.int32)

    out = gru_model_forward(input1, input2, params)
    out = jax.block_until_ready(out)

    ref = reference_forward(input1, input2, params)
    assert out.shape == (batch, vocab_size1)
    assert jnp.allclose(out, ref, atol=1e-3, rtol=1e-3), "mismatch vs pure-JAX reference"

    print("KERNEL_OK")
</pallas_src>

<mosaic_0001>
module attributes {stable_mosaic.version = 11 : i64} {
  func.func @gru_step_kernel(%arg0: i32, %arg1: i32, %arg2: memref<8x8x16xf32, #tpu.memory_space<vmem>>, %arg3: memref<16x384xf32, #tpu.memory_space<vmem>>, %arg4: memref<128x384xf32, #tpu.memory_space<vmem>>, %arg5: memref<1x384xf32, #tpu.memory_space<vmem>>, %arg6: memref<1x128xf32, #tpu.memory_space<vmem>>, %arg7: memref<128x128xf32, #tpu.memory_space<vmem>>, %arg8: memref<1x128xf32, #tpu.memory_space<vmem>>, %arg9: memref<8x128xf32, #tpu.memory_space<vmem>>, %arg10: memref<64x384xf32, #tpu.memory_space<vmem>>, %arg11: memref<8x128xf32, #tpu.memory_space<vmem>>) attributes {dimension_semantics = [#tpu.dimension_semantics<parallel>, #tpu.dimension_semantics<arbitrary>], iteration_bounds = array<i64: 1, 1>, scalar_prefetch = 0 : i64, scratch_operands = 2 : i64, tpu.core_type = #tpu.core_type<tc>, window_params = [{transform_indices = @transform_0, window_bounds = array<i64: 8, 8, 16>}, {pipeline_mode = #tpu.pipeline_mode<synchronous>, transform_indices = @transform_1, window_bounds = array<i64: 16, 384>}, {pipeline_mode = #tpu.pipeline_mode<synchronous>, transform_indices = @transform_2, window_bounds = array<i64: 128, 384>}, {pipeline_mode = #tpu.pipeline_mode<synchronous>, transform_indices = @transform_3, window_bounds = array<i64: 1, 384>}, {pipeline_mode = #tpu.pipeline_mode<synchronous>, transform_indices = @transform_4, window_bounds = array<i64: 1, 128>}, {pipeline_mode = #tpu.pipeline_mode<synchronous>, transform_indices = @transform_5, window_bounds = array<i64: 128, 128>}, {pipeline_mode = #tpu.pipeline_mode<synchronous>, transform_indices = @transform_6, window_bounds = array<i64: 1, 128>}, {transform_indices = @transform_7, window_bounds = array<i64: 8, 128>}]} {
    %c0_i32 = arith.constant 0 : i32
    %0 = arith.cmpi eq, %arg1, %c0_i32 : i32
    %1 = arith.extui %0 : i1 to i32
    %c0_i32_0 = arith.constant 0 : i32
    %2 = arith.cmpi ne, %1, %c0_i32_0 : i32
    scf.if %2 {
      %cst_89 = arith.constant 0.000000e+00 : f32
      %251 = vector.broadcast %cst_89 : f32 to vector<8x128xf32>
      %c0_90 = arith.constant 0 : index
      %c0_91 = arith.constant 0 : index
      %252 = vector.load %arg11[%c0_90, %c0_91] : memref<8x128xf32, #tpu.memory_space<vmem>>, vector<8x128xf32>
      tpu.vector_store %arg11[%c0_90, %c0_91], %251 {strides = array<i32>} : memref<8x128xf32, #tpu.memory_space<vmem>>, vector<8x128xf32>,
    } else {
    }
    %c0 = arith.constant 0 : index
    %c0_1 = arith.constant 0 : index
    %c0_2 = arith.constant 0 : index
    %3 = vector.load %arg2[%c0, %c0_1, %c0_2] : memref<8x8x16xf32, #tpu.memory_space<vmem>>, vector<8x8x16xf32>
    %4 = vector.shape_cast %3 : vector<8x8x16xf32> to vector<64x16xf32>
    %c0_3 = arith.constant 0 : index
    %c0_4 = arith.constant 0 : index
    %5 = vector.load %arg3[%c0_3, %c0_4] : memref<16x384xf32, #tpu.memory_space<vmem>>, vector<16x384xf32>
    %cst = arith.constant dense<0.000000e+00> : vector<64x384xf32>
    %6 = tpu.matmul %4, %5, %cst {dimension_numbers = #tpu.dot_dimension_numbers<[1], [0], [0], [1], [0, 0, 1, 1], [], []>} : vector<64x16xf32>, vector<16x384xf32>, vector<64x384xf32> -> vector<64x384xf32>
    %c0_5 = arith.constant 0 : index
    %c0_6 = arith.constant 0 : index
    %7 = vector.load %arg5[%c0_5, %c0_6] : memref<1x384xf32, #tpu.memory_space<vmem>>, vector<1x384xf32>
    %8 = vector.broadcast %7 : vector<1x384xf32> to vector<64x384xf32>
    %9 = arith.addf %6, %8 : vector<64x384xf32>
    %c0_7 = arith.constant 0 : index
    %c0_8 = arith.constant 0 : index
    %10 = vector.load %arg10[%c0_7, %c0_8] : memref<64x384xf32, #tpu.memory_space<vmem>>, vector<64x384xf32>
    tpu.vector_store %arg10[%c0_7, %c0_8], %9 {strides = array<i32>} : memref<64x384xf32, #tpu.memory_space<vmem>>, vector<64x384xf32>,
    %c0_9 = arith.constant 0 : index
    %c0_10 = arith.constant 0 : index
    %11 = vector.load %arg6[%c0_9, %c0_10] : memref<1x128xf32, #tpu.memory_space<vmem>>, vector<1x128xf32>
    %12 = vector.shape_cast %11 : vector<1x128xf32> to vector<1x128xf32>
    %13 = vector.broadcast %12 : vector<1x128xf32> to vector<8x128xf32>
    %c0_11 = arith.constant 0 : index
    %c0_12 = arith.constant 0 : index
    %14 = vector.load %arg11[%c0_11, %c0_12] : memref<8x128xf32, #tpu.memory_space<vmem>>, vector<8x128xf32>
    %c0_13 = arith.constant 0 : index
    %c0_14 = arith.constant 0 : index
    %15 = vector.load %arg10[%c0_13, %c0_14] : memref<64x384xf32, #tpu.memory_space<vmem>>, vector<8x384xf32>
    %c0_15 = arith.constant 0 : index
    %c0_16 = arith.constant 0 : index
    %16 = vector.load %arg4[%c0_15, %c0_16] : memref<128x384xf32, #tpu.memory_space<vmem>>, vector<128x256xf32>
    %cst_17 = arith.constant dense<0.000000e+00> : vector<8x256xf32>
    %17 = tpu.matmul %14, %16, %cst_17 {dimension_numbers = #tpu.dot_dimension_numbers<[1], [0], [0], [1], [0, 0, 1, 1], [], []>} : vector<8x128xf32>, vector<128x256xf32>, vector<8x256xf32> -> vector<8x256xf32>
    %18 = vector.extract_strided_slice %15 {offsets = [0, 0], sizes = [8, 128], strides = [1, 1]} : vector<8x384xf32> to vector<8x128xf32>
    %19 = vector.extract_strided_slice %17 {offsets = [0, 0], sizes = [8, 128], strides = [1, 1]} : vector<8x256xf32> to vector<8x128xf32>
    %20 = arith.addf %18, %19 : vector<8x128xf32>
    %21 = arith.negf %20 : vector<8x128xf32>
    %22 = math.exp %21 : vector<8x128xf32>
    %cst_18 = arith.constant 1.000000e+00 : f32
    %23 = vector.broadcast %cst_18 : f32 to vector<8x128xf32>
    %24 = arith.addf %23, %22 : vector<8x128xf32>
    %25 = arith.divf %23, %24 : vector<8x128xf32>
    %26 = vector.extract_strided_slice %15 {offsets = [0, 128], sizes = [8, 128], strides = [1, 1]} : vector<8x384xf32> to vector<8x128xf32>
    %27 = vector.extract_strided_slice %17 {offsets = [0, 128], sizes = [8, 128], strides = [1, 1]} : vector<8x256xf32> to vector<8x128xf32>
    %28 = arith.addf %26, %27 : vector<8x128xf32>
    %29 = arith.negf %28 : vector<8x128xf32>
    %30 = math.exp %29 : vector<8x128xf32>
    %cst_19 = arith.constant 1.000000e+00 : f32
    %31 = vector.broadcast %cst_19 : f32 to vector<8x128xf32>
    %32 = arith.addf %31, %30 : vector<8x128xf32>
    %33 = arith.divf %31, %32 : vector<8x128xf32>
    %c0_20 = arith.constant 0 : index
    %c256 = arith.constant 256 : index
    %34 = vector.load %arg4[%c0_20, %c256] : memref<128x384xf32, #tpu.memory_space<vmem>>, vector<128x128xf32>
    %cst_21 = arith.constant dense<0.000000e+00> : vector<8x128xf32>
    %35 = tpu.matmul %14, %34, %cst_21 {dimension_numbers = #tpu.dot_dimension_numbers<[1], [0], [0], [1], [0, 0, 1, 1], [], []>} : vector<8x128xf32>, vector<128x128xf32>, vector<8x128xf32> -> vector<8x128xf32>
    %36 = vector.extract_strided_slice %15 {offsets = [0, 256], sizes = [8, 128], strides = [1, 1]} : vector<8x384xf32> to vector<8x128xf32>
    %37 = arith.addf %35, %13 : vector<8x128xf32>
    %38 = arith.mulf %25, %37 : vector<8x128xf32>
    %39 = arith.addf %36, %38 : vector<8x128xf32>
    %40 = math.tanh %39 : vector<8x128xf32>
    %41 = arith.subf %14, %40 : vector<8x128xf32>
    %42 = arith.mulf %33, %41 : vector<8x128xf32>
    %43 = arith.addf %40, %42 : vector<8x128xf32>
    %c8 = arith.constant 8 : index
    %c0_22 = arith.constant 0 : index
    %44 = vector.load %arg10[%c8, %c0_22] : memref<64x384xf32, #tpu.memory_space<vmem>>, vector<8x384xf32>
    %c0_23 = arith.constant 0 : index
    %c0_24 = arith.constant 0 : index
    %45 = vector.load %arg4[%c0_23, %c0_24] : memref<128x384xf32, #tpu.memory_space<vmem>>, vector<128x256xf32>
    %cst_25 = arith.constant dense<0.000000e+00> : vector<8x256xf32>
    %46 = tpu.matmul %43, %45, %cst_25 {dimension_numbers = #tpu.dot_dimension_numbers<[1], [0], [0], [1], [0, 0, 1, 1], [], []>} : vector<8x128xf32>, vector<128x256xf32>, vector<8x256xf32> -> vector<8x256xf32>
    %47 = vector.extract_strided_slice %44 {offsets = [0, 0], sizes = [8, 128], strides = [1, 1]} : vector<8x384xf32> to vector<8x128xf32>
    %48 = vector.extract_strided_slice %46 {offsets = [0, 0], sizes = [8, 128], strides = [1, 1]} : vector<8x256xf32> to vector<8x128xf32>
    %49 = arith.addf %47, %48 : vector<8x128xf32>
    %50 = arith.negf %49 : vector<8x128xf32>
    %51 = math.exp %50 : vector<8x128xf32>
    %cst_26 = arith.constant 1.000000e+00 : f32
    %52 = vector.broadcast %cst_26 : f32 to vector<8x128xf32>
    %53 = arith.addf %52, %51 : vector<8x128xf32>
    %54 = arith.divf %52, %53 : vector<8x128xf32>
    %55 = vector.extract_strided_slice %44 {offsets = [0, 128], sizes = [8, 128], strides = [1, 1]} : vector<8x384xf32> to vector<8x128xf32>
    %56 = vector.extract_strided_slice %46 {offsets = [0, 128], sizes = [8, 128], strides = [1, 1]} : vector<8x256xf32> to vector<8x128xf32>
    %57 = arith.addf %55, %56 : vector<8x128xf32>
    %58 = arith.negf %57 : vector<8x128xf32>
    %59 = math.exp %58 : vector<8x128xf32>
    %cst_27 = arith.constant 1.000000e+00 : f32
    %60 = vector.broadcast %cst_27 : f32 to vector<8x128xf32>
    %61 = arith.addf %60, %59 : vector<8x128xf32>
    %62 = arith.divf %60, %61 : vector<8x128xf32>
    %c0_28 = arith.constant 0 : index
    %c256_29 = arith.constant 256 : index
    %63 = vector.load %arg4[%c0_28, %c256_29] : memref<128x384xf32, #tpu.memory_space<vmem>>, vector<128x128xf32>
    %cst_30 = arith.constant dense<0.000000e+00> : vector<8x128xf32>
    %64 = tpu.matmul %43, %63, %cst_30 {dimension_numbers = #tpu.dot_dimension_numbers<[1], [0], [0], [1], [0, 0, 1, 1], [], []>} : vector<8x128xf32>, vector<128x128xf32>, vector<8x128xf32> -> vector<8x128xf32>
    %65 = vector.extract_strided_slice %44 {offsets = [0, 256], sizes = [8, 128], strides = [1, 1]} : vector<8x384xf32> to vector<8x128xf32>
    %66 = arith.addf %64, %13 : vector<8x128xf32>
    %67 = arith.mulf %54, %66 : vector<8x128xf32>
    %68 = arith.addf %65, %67 : vector<8x128xf32>
    %69 = math.tanh %68 : vector<8x128xf32>
    %70 = arith.subf %43, %69 : vector<8x128xf32>
    %71 = arith.mulf %62, %70 : vector<8x128xf32>
    %72 = arith.addf %69, %71 : vector<8x128xf32>
    %c16 = arith.constant 16 : index
    %c0_31 = arith.constant 0 : index
    %73 = vector.load %arg10[%c16, %c0_31] : memref<64x384xf32, #tpu.memory_space<vmem>>, vector<8x384xf32>
    %c0_32 = arith.constant 0 : index
    %c0_33 = arith.constant 0 : index
    %74 = vector.load %arg4[%c0_32, %c0_33] : memref<128x384xf32, #tpu.memory_space<vmem>>, vector<128x256xf32>
    %cst_34 = arith.constant dense<0.000000e+00> : vector<8x256xf32>
    %75 = tpu.matmul %72, %74, %cst_34 {dimension_numbers = #tpu.dot_dimension_numbers<[1], [0], [0], [1], [0, 0, 1, 1], [], []>} : vector<8x128xf32>, vector<128x256xf32>, vector<8x256xf32> -> vector<8x256xf32>
    %76 = vector.extract_strided_slice %73 {offsets = [0, 0], sizes = [8, 128], strides = [1, 1]} : vector<8x384xf32> to vector<8x128xf32>
    %77 = vector.extract_strided_slice %75 {offsets = [0, 0], sizes = [8, 128], strides = [1, 1]} : vector<8x256xf32> to vector<8x128xf32>
    %78 = arith.addf %76, %77 : vector<8x128xf32>
    %79 = arith.negf %78 : vector<8x128xf32>
    %80 = math.exp %79 : vector<8x128xf32>
    %cst_35 = arith.constant 1.000000e+00 : f32
    %81 = vector.broadcast %cst_35 : f32 to vector<8x128xf32>
    %82 = arith.addf %81, %80 : vector<8x128xf32>
    %83 = arith.divf %81, %82 : vector<8x128xf32>
    %84 = vector.extract_strided_slice %73 {offsets = [0, 128], sizes = [8, 128], strides = [1, 1]} : vector<8x384xf32> to vector<8x128xf32>
    %85 = vector.extract_strided_slice %75 {offsets = [0, 128], sizes = [8, 128], strides = [1, 1]} : vector<8x256xf32> to vector<8x128xf32>
    %86 = arith.addf %84, %85 : vector<8x128xf32>
    %87 = arith.negf %86 : vector<8x128xf32>
    %88 = math.exp %87 : vector<8x128xf32>
    %cst_36 = arith.constant 1.000000e+00 : f32
    %89 = vector.broadcast %cst_36 : f32 to vector<8x128xf32>
    %90 = arith.addf %89, %88 : vector<8x128xf32>
    %91 = arith.divf %89, %90 : vector<8x128xf32>
    %c0_37 = arith.constant 0 : index
    %c256_38 = arith.constant 256 : index
    %92 = vector.load %arg4[%c0_37, %c256_38] : memref<128x384xf32, #tpu.memory_space<vmem>>, vector<128x128xf32>
    %cst_39 = arith.constant dense<0.000000e+00> : vector<8x128xf32>
    %93 = tpu.matmul %72, %92, %cst_39 {dimension_numbers = #tpu.dot_dimension_numbers<[1], [0], [0], [1], [0, 0, 1, 1], [], []>} : vector<8x128xf32>, vector<128x128xf32>, vector<8x128xf32> -> vector<8x128xf32>
    %94 = vector.extract_strided_slice %73 {offsets = [0, 256], sizes = [8, 128], strides = [1, 1]} : vector<8x384xf32> to vector<8x128xf32>
    %95 = arith.addf %93, %13 : vector<8x128xf32>
    %96 = arith.mulf %83, %95 : vector<8x128xf32>
    %97 = arith.addf %94, %96 : vector<8x128xf32>
    %98 = math.tanh %97 : vector<8x128xf32>
    %99 = arith.subf %72, %98 : vector<8x128xf32>
    %100 = arith.mulf %91, %99 : vector<8x128xf32>
    %101 = arith.addf %98, %100 : vector<8x128xf32>
    %c24 = arith.constant 24 : index
    %c0_40 = arith.constant 0 : index
    %102 = vector.load %arg10[%c24, %c0_40] : memref<64x384xf32, #tpu.memory_space<vmem>>, vector<8x384xf32>
    %c0_41 = arith.constant 0 : index
    %c0_42 = arith.constant 0 : index
    %103 = vector.load %arg4[%c0_41, %c0_42] : memref<128x384xf32, #tpu.memory_space<vmem>>, vector<128x256xf32>
    %cst_43 = arith.constant dense<0.000000e+00> : vector<8x256xf32>
    %104 = tpu.matmul %101, %103, %cst_43 {dimension_numbers = #tpu.dot_dimension_numbers<[1], [0], [0], [1], [0, 0, 1, 1], [], []>} : vector<8x128xf32>, vector<128x256xf32>, vector<8x256xf32> -> vector<8x256xf32>
    %105 = vector.extract_strided_slice %102 {offsets = [0, 0], sizes = [8, 128], strides = [1, 1]} : vector<8x384xf32> to vector<8x128xf32>
    %106 = vector.extract_strided_slice %104 {offsets = [0, 0], sizes = [8, 128], strides = [1, 1]} : vector<8x256xf32> to vector<8x128xf32>
    %107 = arith.addf %105, %106 : vector<8x128xf32>
    %108 = arith.negf %107 : vector<8x128xf32>
    %109 = math.exp %108 : vector<8x128xf32>
    %cst_44 = arith.constant 1.000000e+00 : f32
    %110 = vector.broadcast %cst_44 : f32 to vector<8x128xf32>
    %111 = arith.addf %110, %109 : vector<8x128xf32>
    %112 = arith.divf %110, %111 : vector<8x128xf32>
    %113 = vector.extract_strided_slice %102 {offsets = [0, 128], sizes = [8, 128], strides = [1, 1]} : vector<8x384xf32> to vector<8x128xf32>
    %114 = vector.extract_strided_slice %104 {offsets = [0, 128], sizes = [8, 128], strides = [1, 1]} : vector<8x256xf32> to vector<8x128xf32>
    %115 = arith.addf %113, %114 : vector<8x128xf32>
    %116 = arith.negf %115 : vector<8x128xf32>
    %117 = math.exp %116 : vector<8x128xf32>
    %cst_45 = arith.constant 1.000000e+00 : f32
    %118 = vector.broadcast %cst_45 : f32 to vector<8x128xf32>
    %119 = arith.addf %118, %117 : vector<8x128xf32>
    %120 = arith.divf %118, %119 : vector<8x128xf32>
    %c0_46 = arith.constant 0 : index
    %c256_47 = arith.constant 256 : index
    %121 = vector.load %arg4[%c0_46, %c256_47] : memref<128x384xf32, #tpu.memory_space<vmem>>, vector<128x128xf32>
    %cst_48 = arith.constant dense<0.000000e+00> : vector<8x128xf32>
    %122 = tpu.matmul %101, %121, %cst_48 {dimension_numbers = #tpu.dot_dimension_numbers<[1], [0], [0], [1], [0, 0, 1, 1], [], []>} : vector<8x128xf32>, vector<128x128xf32>, vector<8x128xf32> -> vector<8x128xf32>
    %123 = vector.extract_strided_slice %102 {offsets = [0, 256], sizes = [8, 128], strides = [1, 1]} : vector<8x384xf32> to vector<8x128xf32>
    %124 = arith.addf %122, %13 : vector<8x128xf32>
    %125 = arith.mulf %112, %124 : vector<8x128xf32>
    %126 = arith.addf %123, %125 : vector<8x128xf32>
    %127 = math.tanh %126 : vector<8x128xf32>
    %128 = arith.subf %101, %127 : vector<8x128xf32>
    %129 = arith.mulf %120, %128 : vector<8x128xf32>
    %130 = arith.addf %127, %129 : vector<8x128xf32>
    %c32 = arith.constant 32 : index
    %c0_49 = arith.constant 0 : index
    %131 = vector.load %arg10[%c32, %c0_49] : memref<64x384xf32, #tpu.memory_space<vmem>>, vector<8x384xf32>
    %c0_50 = arith.constant 0 : index
    %c0_51 = arith.constant 0 : index
    %132 = vector.load %arg4[%c0_50, %c0_51] : memref<128x384xf32, #tpu.memory_space<vmem>>, vector<128x256xf32>
    %cst_52 = arith.constant dense<0.000000e+00> : vector<8x256xf32>
    %133 = tpu.matmul %130, %132, %cst_52 {dimension_numbers = #tpu.dot_dimension_numbers<[1], [0], [0], [1], [0, 0, 1, 1], [], []>} : vector<8x128xf32>, vector<128x256xf32>, vector<8x256xf32> -> vector<8x256xf32>
    %134 = vector.extract_strided_slice %131 {offsets = [0, 0], sizes = [8, 128], strides = [1, 1]} : vector<8x384xf32> to vector<8x128xf32>
    %135 = vector.extract_strided_slice %133 {offsets = [0, 0], sizes = [8, 128], strides = [1, 1]} : vector<8x256xf32> to vector<8x128xf32>
    %136 = arith.addf %134, %135 : vector<8x128xf32>
    %137 = arith.negf %136 : vector<8x128xf32>
    %138 = math.exp %137 : vector<8x128xf32>
    %cst_53 = arith.constant 1.000000e+00 : f32
    %139 = vector.broadcast %cst_53 : f32 to vector<8x128xf32>
    %140 = arith.addf %139, %138 : vector<8x128xf32>
    %141 = arith.divf %139, %140 : vector<8x128xf32>
    %142 = vector.extract_strided_slice %131 {offsets = [0, 128], sizes = [8, 128], strides = [1, 1]} : vector<8x384xf32> to vector<8x128xf32>
    %143 = vector.extract_strided_slice %133 {offsets = [0, 128], sizes = [8, 128], strides = [1, 1]} : vector<8x256xf32> to vector<8x128xf32>
    %144 = arith.addf %142, %143 : vector<8x128xf32>
    %145 = arith.negf %144 : vector<8x128xf32>
    %146 = math.exp %145 : vector<8x128xf32>
    %cst_54 = arith.constant 1.000000e+00 : f32
    %147 = vector.broadcast %cst_54 : f32 to vector<8x128xf32>
    %148 = arith.addf %147, %146 : vector<8x128xf32>
    %149 = arith.divf %147, %148 : vector<8x128xf32>
    %c0_55 = arith.constant 0 : index
    %c256_56 = arith.constant 256 : index
    %150 = vector.load %arg4[%c0_55, %c256_56] : memref<128x384xf32, #tpu.memory_space<vmem>>, vector<128x128xf32>
    %cst_57 = arith.constant dense<0.000000e+00> : vector<8x128xf32>
    %151 = tpu.matmul %130, %150, %cst_57 {dimension_numbers = #tpu.dot_dimension_numbers<[1], [0], [0], [1], [0, 0, 1, 1], [], []>} : vector<8x128xf32>, vector<128x128xf32>, vector<8x128xf32> -> vector<8x128xf32>
    %152 = vector.extract_strided_slice %131 {offsets = [0, 256], sizes = [8, 128], strides = [1, 1]} : vector<8x384xf32> to vector<8x128xf32>
    %153 = arith.addf %151, %13 : vector<8x128xf32>
    %154 = arith.mulf %141, %153 : vector<8x128xf32>
    %155 = arith.addf %152, %154 : vector<8x128xf32>
    %156 = math.tanh %155 : vector<8x128xf32>
    %157 = arith.subf %130, %156 : vector<8x128xf32>
    %158 = arith.mulf %149, %157 : vector<8x128xf32>
    %159 = arith.addf %156, %158 : vector<8x128xf32>
    %c40 = arith.constant 40 : index
    %c0_58 = arith.constant 0 : index
    %160 = vector.load %arg10[%c40, %c0_58] : memref<64x384xf32, #tpu.memory_space<vmem>>, vector<8x384xf32>
    %c0_59 = arith.constant 0 : index
    %c0_60 = arith.constant 0 : index
    %161 = vector.load %arg4[%c0_59, %c0_60] : memref<128x384xf32, #tpu.memory_space<vmem>>, vector<128x256xf32>
    %cst_61 = arith.constant dense<0.000000e+00> : vector<8x256xf32>
    %162 = tpu.matmul %159, %161, %cst_61 {dimension_numbers = #tpu.dot_dimension_numbers<[1], [0], [0], [1], [0, 0, 1, 1], [], []>} : vector<8x128xf32>, vector<128x256xf32>, vector<8x256xf32> -> vector<8x256xf32>
    %163 = vector.extract_strided_slice %160 {offsets = [0, 0], sizes = [8, 128], strides = [1, 1]} : vector<8x384xf32> to vector<8x128xf32>
    %164 = vector.extract_strided_slice %162 {offsets = [0, 0], sizes = [8, 128], strides = [1, 1]} : vector<8x256xf32> to vector<8x128xf32>
    %165 = arith.addf %163, %164 : vector<8x128xf32>
    %166 = arith.negf %165 : vector<8x128xf32>
    %167 = math.exp %166 : vector<8x128xf32>
    %cst_62 = arith.constant 1.000000e+00 : f32
    %168 = vector.broadcast %cst_62 : f32 to vector<8x128xf32>
    %169 = arith.addf %168, %167 : vector<8x128xf32>
    %170 = arith.divf %168, %169 : vector<8x128xf32>
    %171 = vector.extract_strided_slice %160 {offsets = [0, 128], sizes = [8, 128], strides = [1, 1]} : vector<8x384xf32> to vector<8x128xf32>
    %172 = vector.extract_strided_slice %162 {offsets = [0, 128], sizes = [8, 128], strides = [1, 1]} : vector<8x256xf32> to vector<8x128xf32>
    %173 = arith.addf %171, %172 : vector<8x128xf32>
    %174 = arith.negf %173 : vector<8x128xf32>
    %175 = math.exp %174 : vector<8x128xf32>
    %cst_63 = arith.constant 1.000000e+00 : f32
    %176 = vector.broadcast %cst_63 : f32 to vector<8x128xf32>
    %177 = arith.addf %176, %175 : vector<8x128xf32>
    %178 = arith.divf %176, %177 : vector<8x128xf32>
    %c0_64 = arith.constant 0 : index
    %c256_65 = arith.constant 256 : index
    %179 = vector.load %arg4[%c0_64, %c256_65] : memref<128x384xf32, #tpu.memory_space<vmem>>, vector<128x128xf32>
    %cst_66 = arith.constant dense<0.000000e+00> : vector<8x128xf32>
    %180 = tpu.matmul %159, %179, %cst_66 {dimension_numbers = #tpu.dot_dimension_numbers<[1], [0], [0], [1], [0, 0, 1, 1], [], []>} : vector<8x128xf32>, vector<128x128xf32>, vector<8x128xf32> -> vector<8x128xf32>
    %181 = vector.extract_strided_slice %160 {offsets = [0, 256], sizes = [8, 128], strides = [1, 1]} : vector<8x384xf32> to vector<8x128xf32>
    %182 = arith.addf %180, %13 : vector<8x128xf32>
    %183 = arith.mulf %170, %182 : vector<8x128xf32>
    %184 = arith.addf %181, %183 : vector<8x128xf32>
    %185 = math.tanh %184 : vector<8x128xf32>
    %186 = arith.subf %159, %185 : vector<8x128xf32>
    %187 = arith.mulf %178, %186 : vector<8x128xf32>
    %188 = arith.addf %185, %187 : vector<8x128xf32>
    %c48 = arith.constant 48 : index
    %c0_67 = arith.constant 0 : index
    %189 = vector.load %arg10[%c48, %c0_67] : memref<64x384xf32, #tpu.memory_space<vmem>>, vector<8x384xf32>
    %c0_68 = arith.constant 0 : index
    %c0_69 = arith.constant 0 : index
    %190 = vector.load %arg4[%c0_68, %c0_69] : memref<128x384xf32, #tpu.memory_space<vmem>>, vector<128x256xf32>
    %cst_70 = arith.constant dense<0.000000e+00> : vector<8x256xf32>
    %191 = tpu.matmul %188, %190, %cst_70 {dimension_numbers = #tpu.dot_dimension_numbers<[1], [0], [0], [1], [0, 0, 1, 1], [], []>} : vector<8x128xf32>, vector<128x256xf32>, vector<8x256xf32> -> vector<8x256xf32>
    %192 = vector.extract_strided_slice %189 {offsets = [0, 0], sizes = [8, 128], strides = [1, 1]} : vector<8x384xf32> to vector<8x128xf32>
    %193 = vector.extract_strided_slice %191 {offsets = [0, 0], sizes = [8, 128], strides = [1, 1]} : vector<8x256xf32> to vector<8x128xf32>
    %194 = arith.addf %192, %193 : vector<8x128xf32>
    %195 = arith.negf %194 : vector<8x128xf32>
    %196 = math.exp %195 : vector<8x128xf32>
    %cst_71 = arith.constant 1.000000e+00 : f32
    %197 = vector.broadcast %cst_71 : f32 to vector<8x128xf32>
    %198 = arith.addf %197, %196 : vector<8x128xf32>
    %199 = arith.divf %197, %198 : vector<8x128xf32>
    %200 = vector.extract_strided_slice %189 {offsets = [0, 128], sizes = [8, 128], strides = [1, 1]} : vector<8x384xf32> to vector<8x128xf32>
    %201 = vector.extract_strided_slice %191 {offsets = [0, 128], sizes = [8, 128], strides = [1, 1]} : vector<8x256xf32> to vector<8x128xf32>
    %202 = arith.addf %200, %201 : vector<8x128xf32>
    %203 = arith.negf %202 : vector<8x128xf32>
    %204 = math.exp %203 : vector<8x128xf32>
    %cst_72 = arith.constant 1.000000e+00 : f32
    %205 = vector.broadcast %cst_72 : f32 to vector<8x128xf32>
    %206 = arith.addf %205, %204 : vector<8x128xf32>
    %207 = arith.divf %205, %206 : vector<8x128xf32>
    %c0_73 = arith.constant 0 : index
    %c256_74 = arith.constant 256 : index
    %208 = vector.load %arg4[%c0_73, %c256_74] : memref<128x384xf32, #tpu.memory_space<vmem>>, vector<128x128xf32>
    %cst_75 = arith.constant dense<0.000000e+00> : vector<8x128xf32>
    %209 = tpu.matmul %188, %208, %cst_75 {dimension_numbers = #tpu.dot_dimension_numbers<[1], [0], [0], [1], [0, 0, 1, 1], [], []>} : vector<8x128xf32>, vector<128x128xf32>, vector<8x128xf32> -> vector<8x128xf32>
    %210 = vector.extract_strided_slice %189 {offsets = [0, 256], sizes = [8, 128], strides = [1, 1]} : vector<8x384xf32> to vector<8x128xf32>
    %211 = arith.addf %209, %13 : vector<8x128xf32>
    %212 = arith.mulf %199, %211 : vector<8x128xf32>
    %213 = arith.addf %210, %212 : vector<8x128xf32>
    %214 = math.tanh %213 : vector<8x128xf32>
    %215 = arith.subf %188, %214 : vector<8x128xf32>
    %216 = arith.mulf %207, %215 : vector<8x128xf32>
    %217 = arith.addf %214, %216 : vector<8x128xf32>
    %c56 = arith.constant 56 : index
    %c0_76 = arith.constant 0 : index
    %218 = vector.load %arg10[%c56, %c0_76] : memref<64x384xf32, #tpu.memory_space<vmem>>, vector<8x384xf32>
    %c0_77 = arith.constant 0 : index
    %c0_78 = arith.constant 0 : index
    %219 = vector.load %arg4[%c0_77, %c0_78] : memref<128x384xf32, #tpu.memory_space<vmem>>, vector<128x256xf32>
    %cst_79 = arith.constant dense<0.000000e+00> : vector<8x256xf32>
    %220 = tpu.matmul %217, %219, %cst_79 {dimension_numbers = #tpu.dot_dimension_numbers<[1], [0], [0], [1], [0, 0, 1, 1], [], []>} : vector<8x128xf32>, vector<128x256xf32>, vector<8x256xf32> -> vector<8x256xf32>
    %221 = vector.extract_strided_slice %218 {offsets = [0, 0], sizes = [8, 128], strides = [1, 1]} : vector<8x384xf32> to vector<8x128xf32>
    %222 = vector.extract_strided_slice %220 {offsets = [0, 0], sizes = [8, 128], strides = [1, 1]} : vector<8x256xf32> to vector<8x128xf32>
    %223 = arith.addf %221, %222 : vector<8x128xf32>
    %224 = arith.negf %223 : vector<8x128xf32>
    %225 = math.exp %224 : vector<8x128xf32>
    %cst_80 = arith.constant 1.000000e+00 : f32
    %226 = vector.broadcast %cst_80 : f32 to vector<8x128xf32>
    %227 = arith.addf %226, %225 : vector<8x128xf32>
    %228 = arith.divf %226, %227 : vector<8x128xf32>
    %229 = vector.extract_strided_slice %218 {offsets = [0, 128], sizes = [8, 128], strides = [1, 1]} : vector<8x384xf32> to vector<8x128xf32>
    %230 = vector.extract_strided_slice %220 {offsets = [0, 128], sizes = [8, 128], strides = [1, 1]} : vector<8x256xf32> to vector<8x128xf32>
    %231 = arith.addf %229, %230 : vector<8x128xf32>
    %232 = arith.negf %231 : vector<8x128xf32>
    %233 = math.exp %232 : vector<8x128xf32>
    %cst_81 = arith.constant 1.000000e+00 : f32
    %234 = vector.broadcast %cst_81 : f32 to vector<8x128xf32>
    %235 = arith.addf %234, %233 : vector<8x128xf32>
    %236 = arith.divf %234, %235 : vector<8x128xf32>
    %c0_82 = arith.constant 0 : index
    %c256_83 = arith.constant 256 : index
    %237 = vector.load %arg4[%c0_82, %c256_83] : memref<128x384xf32, #tpu.memory_space<vmem>>, vector<128x128xf32>
    %cst_84 = arith.constant dense<0.000000e+00> : vector<8x128xf32>
    %238 = tpu.matmul %217, %237, %cst_84 {dimension_numbers = #tpu.dot_dimension_numbers<[1], [0], [0], [1], [0, 0, 1, 1], [], []>} : vector<8x128xf32>, vector<128x128xf32>, vector<8x128xf32> -> vector<8x128xf32>
    %239 = vector.extract_strided_slice %218 {offsets = [0, 256], sizes = [8, 128], strides = [1, 1]} : vector<8x384xf32> to vector<8x128xf32>
    %240 = arith.addf %238, %13 : vector<8x128xf32>
    %241 = arith.mulf %228, %240 : vector<8x128xf32>
    %242 = arith.addf %239, %241 : vector<8x128xf32>
    %243 = math.tanh %242 : vector<8x128xf32>
    %244 = arith.subf %217, %243 : vector<8x128xf32>
    %245 = arith.mulf %236, %244 : vector<8x128xf32>
    %246 = arith.addf %243, %245 : vector<8x128xf32>
    %c0_85 = arith.constant 0 : index
    %c0_86 = arith.constant 0 : index
    %247 = vector.load %arg11[%c0_85, %c0_86] : memref<8x128xf32, #tpu.memory_space<vmem>>, vector<8x128xf32>
    tpu.vector_store %arg11[%c0_85, %c0_86], %246 {strides = array<i32>} : memref<8x128xf32, #tpu.memory_space<vmem>>, vector<8x128xf32>,
    %c0_i32_87 = arith.constant 0 : i32
    %248 = arith.cmpi eq, %arg1, %c0_i32_87 : i32
    %249 = arith.extui %248 : i1 to i32
    %c0_i32_88 = arith.constant 0 : i32
    %250 = arith.cmpi ne, %249, %c0_i32_88 : i32
    scf.if %250 {
      %c0_89 = arith.constant 0 : index
      %c0_90 = arith.constant 0 : index
      %251 = vector.load %arg7[%c0_89, %c0_90] : memref<128x128xf32, #tpu.memory_space<vmem>>, vector<128x128xf32>
      %cst_91 = arith.constant dense<0.000000e+00> : vector<8x128xf32>
      %252 = tpu.matmul %246, %251, %cst_91 {dimension_numbers = #tpu.dot_dimension_numbers<[1], [0], [0], [1], [0, 0, 1, 1], [], []>} : vector<8x128xf32>, vector<128x128xf32>, vector<8x128xf32> -> vector<8x128xf32>
      %c0_92 = arith.constant 0 : index
      %c0_93 = arith.constant 0 : index
      %253 = vector.load %arg8[%c0_92, %c0_93] : memref<1x128xf32, #tpu.memory_space<vmem>>, vector<1x128xf32>
      %254 = vector.broadcast %253 : vector<1x128xf32> to vector<8x128xf32>
      %255 = arith.addf %252, %254 : vector<8x128xf32>
      %c0_94 = arith.constant 0 : index
      %c0_95 = arith.constant 0 : index
      %256 = vector.load %arg9[%c0_94, %c0_95] : memref<8x128xf32, #tpu.memory_space<vmem>>, vector<8x128xf32>
      tpu.vector_store %arg9[%c0_94, %c0_95], %255 {strides = array<i32>} : memref<8x128xf32, #tpu.memory_space<vmem>>, vector<8x128xf32>,
    } else {
    }
    return
  }
  func.func @transform_0(%arg0: i32, %arg1: i32) -> (i32, i32, i32) {
    %c0_i32 = arith.constant 0 : i32
    %c0_i32_0 = arith.constant 0 : i32
    return %arg1, %arg0, %c0_i32 : i32, i32, i32
  }
  func.func @transform_1(%arg0: i32, %arg1: i32) -> (i32, i32) {
    %c0_i32 = arith.constant 0 : i32
    %c0_i32_0 = arith.constant 0 : i32
    %c0_i32_1 = arith.constant 0 : i32
    return %c0_i32, %c0_i32_0 : i32, i32
  }
  func.func @transform_2(%arg0: i32, %arg1: i32) -> (i32, i32) {
    %c0_i32 = arith.constant 0 : i32
    %c0_i32_0 = arith.constant 0 : i32
    %c0_i32_1 = arith.constant 0 : i32
    return %c0_i32, %c0_i32_0 : i32, i32
  }
  func.func @transform_3(%arg0: i32, %arg1: i32) -> (i32, i32) {
    %c0_i32 = arith.constant 0 : i32
    %c0_i32_0 = arith.constant 0 : i32
    %c0_i32_1 = arith.constant 0 : i32
    return %c0_i32, %c0_i32_0 : i32, i32
  }
  func.func @transform_4(%arg0: i32, %arg1: i32) -> (i32, i32) {
    %c0_i32 = arith.constant 0 : i32
    %c0_i32_0 = arith.constant 0 : i32
    %c0_i32_1 = arith.constant 0 : i32
    return %c0_i32, %c0_i32_0 : i32, i32
  }
  func.func @transform_5(%arg0: i32, %arg1: i32) -> (i32, i32) {
    %c0_i32 = arith.constant 0 : i32
    %c0_i32_0 = arith.constant 0 : i32
    %c0_i32_1 = arith.constant 0 : i32
    return %c0_i32, %c0_i32_0 : i32, i32
  }
  func.func @transform_6(%arg0: i32, %arg1: i32) -> (i32, i32) {
    %c0_i32 = arith.constant 0 : i32
    %c0_i32_0 = arith.constant 0 : i32
    %c0_i32_1 = arith.constant 0 : i32
    return %c0_i32, %c0_i32_0 : i32, i32
  }
  func.func @transform_7(%arg0: i32, %arg1: i32) -> (i32, i32) {
    %c0_i32 = arith.constant 0 : i32
    %c0_i32_0 = arith.constant 0 : i32
    return %arg0, %c0_i32 : i32, i32
  }
}

</mosaic_0001>

<bundles_post_ra>
// kernel: tpu_custom_call.1
= control target key start
LH: loop header
LB: loop body
LE: loop exit
PB: predicated region body
PF: predicated region fallthrough
CT: control target
= control target key end

     0   :  { %12 = vsyncpa [#allocation5], 0  ;;  %s2423_s0 = inlined_call_operand.hbm [shape: f32[8,8,16], index: 0, kind: input, shape index: {}]   ;;  %s2424_s1 = inlined_call_operand.hbm [shape: f32[16,384], index: 1, kind: input, shape index: {}]   ;;  %s2425_s2 = inlined_call_operand.hbm [shape: f32[128,384], index: 2, kind: input, shape index: {}]   ;;  %s2426_s3 = inlined_call_operand.hbm [shape: f32[1,384], index: 3, kind: input, shape index: {}]   ;;  %s2427_s4 = inlined_call_operand.vmem [shape: f32[1,128], index: 4, kind: input, shape index: {}]   ;;  %s2428_s5 = inlined_call_operand.hbm [shape: f32[128,128], index: 5, kind: input, shape index: {}]   ;;  %s2429_s6 = inlined_call_operand.vmem [shape: f32[1,128], index: 6, kind: input, shape index: {}]   ;;  %s2430_s7 = inlined_call_operand.hbm [shape: f32[8,128], index: 7, kind: output, shape index: {}]  }
   0x1   :  { %13 = vsyncpa [#allocation8], 0 }
   0x2   :  { %14 = vsyncpa [#allocation11], 0  ;;  %s33_s26 = sshll.u32 %s2424_s1, 4  ;;  %s34_s26 = int_to_ptr.hbm [resolvable:$true] %s33_s26 }
   0x3   :  { %15 = vsyncpa [#allocation6], 0  ;;  %s1625_s27 = smov [#allocation7]   ;;  %s60_s8 = sshll.u32 %s2426_s3, 4  ;;  %s61_s8 = int_to_ptr.hbm [resolvable:$true] %s60_s8 }
   0x4   :  { %s35_s28 = sshll.u32 %s1625_s27, 4  ;;  %s1626_s9 = smov 384   ;;  %s36_s28 = int_to_ptr.vmem [resolvable:$true] %s35_s28 }
   0x5   :  { %s1627_s10 = smov 24   ;;  %s1628_s11 = smov [#allocation10]  }
   0x6   :  { %41 = dma.hbm_to_vmem [thread:$0]  %s34_s26, 768, %s36_s28, [#allocation8], %s1626_s9, %s1626_s9, %s1627_s10  }
   0x7   :  { %s62_s12 = sshll.u32 %s1628_s11, 4  ;;  %s20_s15 = sshll.u32 %s2423_s0, 4  ;;  %s63_s12 = int_to_ptr.vmem [resolvable:$true] %s62_s12  ;;  %s21_s15 = int_to_ptr.hbm [resolvable:$true] %s20_s15 }
   0x8   :  { %65 = dma.hbm_to_vmem [thread:$0]  %s61_s8, 48, %s63_s12, [#allocation11]  }
   0x9   :  { %s1629_s1 = smov [#allocation4]   ;;  %s46_s3 = sshll.u32 %s2425_s2, 4  ;;  %s47_s3 = int_to_ptr.hbm [resolvable:$true] %s46_s3 }
   0xa   :  { %s22_s16 = sshll.u32 %s1629_s1, 4  ;;  %s1630_s19 = smov 128   ;;  %s23_s16 = int_to_ptr.vmem [resolvable:$true] %s22_s16 }
   0xb   :  { %s1631_s20 = smov 8   ;;  %s1632_s21 = smov [#allocation9]  }
   0xc   :  { %28 = dma.hbm_to_vmem [thread:$0]  %s21_s15, 1024, %s23_s16, [#allocation5], %s1630_s19, %s1630_s19, %s1631_s20  }
   0xd   :  { %s48_s22 = sshll.u32 %s1632_s21, 4  ;;  %s72_s0 = sshll.u32 %s2428_s5, 4  ;;  %s49_s22 = int_to_ptr.vmem [resolvable:$true] %s48_s22  ;;  %s73_s0 = int_to_ptr.hbm [resolvable:$true] %s72_s0 }
   0xe   :  { %54 = dma.hbm_to_vmem [thread:$0]  %s47_s3, 6144, %s49_s22, [#allocation8], %s1626_s9, %s1626_s9, %s1627_s10  }
   0xf   :  { %s1633_s25 = smov [#allocation12]  }
  0x10   :  { %s74_s26 = sshll.u32 %s1633_s25, 4  ;;  %s75_s26 = int_to_ptr.vmem [resolvable:$true] %s74_s26 }
  0x11   :  { %80 = dma.hbm_to_vmem [thread:$0]  %s73_s0, 2048, %s75_s26, [#allocation11], %s1630_s19, %s1630_s19, %s1631_s20  }
  0x12   :  { %1617 = dma.done.wait [#allocation5], 1024  }
  0x13   :  { %1618 = vsyncadd [#allocation5], 4294966272 }
  0x14   :  { %1619 = dma.done.wait [#allocation8], 6912  }
  0x15   :  { %1620 = vsyncadd [#allocation8], 4294960384 }
  0x16   :  { %1621 = dma.done.wait [#allocation11], 2096  }
  0x17   :  { %1622 = vsyncadd [#allocation11], 4294965200  ;;  %v119_v0 = vld [vmem:[#allocation7 + $0x18] sm:$0xff]  ;;  %v116_v2 = vld [vmem:[#allocation7] sm:$0xff]  ;;  %vm130_vm0 = vcmask 130048   ;;  %v1634_v39 = vmov 0.0  }
  0x18   :  { %v1691_v1 = vld [vmem:[#allocation9 + $0x168] sm:$0xff]  ;;  %169 = vmatpush.msra.mxu0 %v119_v0  ;;  %v1694_v3 = vld [vmem:[#allocation9 + $0x150] sm:$0xff]  ;;  %v1698_v5 = vld [vmem:[#allocation9 + $0x138] sm:$0xff]  ;;  %s1635_s30 = smov [#allocation13]   ;;  %s1279_s11 = sshll.u32 %s2430_s7, 4  ;;  %s1280_s11 = int_to_ptr.hbm [resolvable:$true] %s1279_s11 }
  0x19   :  { %342 = vmatpush.msra.mxu3 %v1691_v1  ;;  %v1696_v4 = vld [vmem:[#allocation4] sm:$0xff]  ;;  %v1703_v6 = vld [vmem:[#allocation9 + $0x120] sm:$0xff]  ;;  %v1706_v7 = vld [vmem:[#allocation9 + $0x178] sm:$0xff]  ;;  %s1277_s8 = sshll.u32 %s1635_s30, 4  ;;  %s1278_s8 = int_to_ptr.vmem [resolvable:$true] %s1277_s8 }
  0x1a   :  { %170 = vmatpush.msra.mxu0 %v116_v2  ;;  %v1708_v8 = vld [vmem:[#allocation9 + $0x108] sm:$0xff]  ;;  %v1711_v9 = vld [vmem:[#allocation9 + $0x160] sm:$0xff]  ;;  %v1716_v11 = vld [vmem:[#allocation9 + $0xf0] sm:$0xff] }
  0x1b   :  { %343 = vmatpush.msra.mxu3 %v1694_v3  ;;  %1291 = vmatmul.msk.f32.vlgmr.msra.gmra.mxu0 %vm130_vm0, %v1696_v4  ;;  %v1714_v10 = vld [vmem:[#allocation9 + $0x148] sm:$0xff]  ;;  %v1720_v12 = vld [vmem:[#allocation4 + $0x8] sm:$0xff]  ;;  %v1725_v14 = vld [vmem:[#allocation9 + $0x130] sm:$0xff] }
  0x1c   :  { %438 = vmatpush.msrb.mxu0 %v1706_v7  ;;  %v1722_v13 = vld [vmem:[#allocation9 + $0xd8] sm:$0xff]  ;;  %v1728_v15 = vld [vmem:[#allocation9 + $0xc0] sm:$0xff]  ;;  %v1736_v17 = vld [vmem:[#allocation9 + $0xa8] sm:$0xff] }
  0x1d   :  { %344 = vmatpush.msra.mxu3 %v1698_v5  ;;  %v1732_v16 = vld [vmem:[#allocation9 + $0x118] sm:$0xff]  ;;  %v1738_v18 = vld [vmem:[#allocation9 + $0x100] sm:$0xff]  ;;  %v1742_v19 = vld [vmem:[#allocation9 + $0x90] sm:$0xff] }
  0x1e   :  { %439 = vmatpush.msrb.mxu0 %v1711_v9  ;;  %v1744_v20 = vld [vmem:[#allocation9 + $0xe8] sm:$0xff]  ;;  %v1747_v21 = vld [vmem:[#allocation4 + $0x10] sm:$0xff]  ;;  %v1750_v22 = vld [vmem:[#allocation9 + $0x78] sm:$0xff] }
  0x1f   :  { %345 = vmatpush.msra.mxu3 %v1703_v6  ;;  %v1752_v23 = vld [vmem:[#allocation9 + $0xd0] sm:$0xff]  ;;  %v1758_v24 = vld [vmem:[#allocation9 + $0x60] sm:$0xff]  ;;  %v1762_v25 = vld [vmem:[#allocation9 + $0xb8] sm:$0xff] }
  0x20   :  { %440 = vmatpush.msrb.mxu0 %v1714_v10  ;;  %v1764_v26 = vld [vmem:[#allocation9 + $0x48] sm:$0xff]  ;;  %v1768_v27 = vld [vmem:[#allocation9 + $0xa0] sm:$0xff]  ;;  %v1770_v28 = vld [vmem:[#allocation9 + $0x30] sm:$0xff] }
  0x21   :  { %346 = vmatpush.msra.mxu3 %v1708_v8  ;;  %2448 = vst [vmem:[#allocation18_spill] sm:$0xff] %v1770_v28  ;;  %v1773_v29 = vld [vmem:[#allocation4 + $0x18] sm:$0xff]  ;;  %v1778_v31 = vld [vmem:[#allocation9 + $0x18] sm:$0xff]  ;;  %v1782_v32 = vld [vmem:[#allocation9 + $0x70] sm:$0xff] }
  0x22   :  { %441 = vmatpush.msrb.mxu0 %v1725_v14  ;;  %v1776_v30 = vld [vmem:[#allocation9 + $0x88] sm:$0xff]  ;;  %2449 = vst [vmem:[#allocation19_spill] sm:$0xff] %v1778_v31  ;;  %v1786_v33 = vld [vmem:[#allocation9] sm:$0xff]  ;;  %v121_v34 = vld [vmem:[#allocation7 + $0x28] sm:$0xff] }
  0x23   :  { %347 = vmatpush.msra.mxu3 %v1716_v11  ;;  %1292 = vmatmul.msk.f32.gmra.mxu0 %vm130_vm0, %v1720_v12  ;;  %2450 = vst [vmem:[#allocation20_spill] sm:$0xff] %v1786_v33  ;;  %v1790_v35 = vld [vmem:[#allocation9 + $0x58] sm:$0xff]  ;;  %v1792_v36 = vld [vmem:[#allocation9 + $0x170] sm:$0xff]  ;;  %v118_v37 = vld [vmem:[#allocation7 + $0x10] sm:$0xff] }
  0x24   :  { %442 = vmatpush.msrb.mxu0 %v1732_v16  ;;  %251 = vmatpush.msra.mxu2 %v121_v34  ;;  %v1796_v38 = vld [vmem:[#allocation9 + $0x40] sm:$0xff]  ;;  %v1799_v40 = vld [vmem:[#allocation9 + $0x158] sm:$0xff]  ;;  %v120_v41 = vld [vmem:[#allocation7 + $0x20] sm:$0xff] }
  0x25   :  { %348 = vmatpush.msra.mxu3 %v1722_v13  ;;  %2451 = vst [vmem:[#allocation21_spill] sm:$0xff] %v1796_v38  ;;  %v1801_v42 = vld [vmem:[#allocation9 + $0x28] sm:$0xff]  ;;  %v1804_v43 = vld [vmem:[#allocation4 + $0x20] sm:$0xff]  ;;  %v117_v44 = vld [vmem:[#allocation7 + $0x8] sm:$0xff]  ;;  %210 = vmatpush.msra.mxu1 %v120_v41 }
  0x26   :  { %443 = vmatpush.msrb.mxu0 %v1738_v18  ;;  %252 = vmatpush.msra.mxu2 %v118_v37  ;;  %2452 = vst [vmem:[#allocation22_spill] sm:$0xff] %v1801_v42  ;;  %v1807_v45 = vld [vmem:[#allocation9 + $0x140] sm:$0xff]  ;;  %v1813_v46 = vld [vmem:[#allocation9 + $0x10] sm:$0xff]  ;;  %v1817_v47 = vld [vmem:[#allocation9 + $0x128] sm:$0xff] }
  0x27   :  { %349 = vmatpush.msra.mxu3 %v1728_v15  ;;  %1307 = vmatmul.msk.f32.vlgmr.msra.gmra.mxu2 %vm130_vm0, %v1696_v4  ;;  %2453 = vst [vmem:[#allocation23_spill] sm:$0xff] %v1813_v46  ;;  %v1822_v48 = vld [vmem:[#allocation9 + $0x110] sm:$0xff]  ;;  %v1828_v49 = vld [vmem:[#allocation9 + $0xf8] sm:$0xff]  ;;  %v1836_v51 = vld [vmem:[#allocation9 + $0xe0] sm:$0xff] }
  0x28   :  { %444 = vmatpush.msrb.mxu0 %v1744_v20  ;;  %211 = vmatpush.msra.mxu1 %v117_v44  ;;  %v1833_v50 = vld [vmem:[#allocation4 + $0x28] sm:$0xff]  ;;  %v1845_v52 = vld [vmem:[#allocation9 + $0xc8] sm:$0xff]  ;;  %v1851_v53 = vld [vmem:[#allocation9 + $0xb0] sm:$0xff] }
  0x29   :  { %350 = vmatpush.msra.mxu3 %v1736_v17  ;;  %1299 = vmatmul.msk.f32.vlgmr.msra.gmra.mxu1 %vm130_vm0, %v1696_v4  ;;  %v1857_v54 = vld [vmem:[#allocation9 + $0x98] sm:$0xff]  ;;  %v1862_v55 = vld [vmem:[#allocation4 + $0x30] sm:$0xff]  ;;  %v1874_v57 = vld [vmem:[#allocation9 + $0x68] sm:$0xff] }
  0x2a   :  { %445 = vmatpush.msrb.mxu0 %v1752_v23  ;;  %467 = vmatpush.msrb.mxu1 %v1691_v1  ;;  %v1865_v56 = vld [vmem:[#allocation9 + $0x80] sm:$0xff]  ;;  %v1880_v58 = vld [vmem:[#allocation9 + $0x50] sm:$0xff]  ;;  %v1886_v59 = vld [vmem:[#allocation9 + $0x38] sm:$0xff] }
  0x2b   :  { %351 = vmatpush.msra.mxu3 %v1742_v19  ;;  %1293 = vmatmul.msk.f32.gmra.mxu0 %vm130_vm0, %v1747_v21  ;;  %2454 = vst [vmem:[#allocation24_spill] sm:$0xff] %v1886_v59  ;;  %v1891_v60 = vld [vmem:[#allocation4 + $0x38] sm:$0xff]  ;;  %v1894_v61 = vld [vmem:[#allocation9 + $0x20] sm:$0xff] }
  0x2c   :  { %446 = vmatpush.msrb.mxu0 %v1762_v25  ;;  %487 = vmatpush.msrb.mxu2 %v1792_v36  ;;  %2455 = vst [vmem:[#allocation25_spill] sm:$0xff] %v1894_v61  ;;  %v1903_v62 = vld [vmem:[#allocation9 + $0x8] sm:$0xff]  ;;  %v122_v0 = vld [vmem:[#allocation10] sm:$0x7] }
  0x2d   :  { %352 = vmatpush.msra.mxu3 %v1750_v22  ;;  %468 = vmatpush.msrb.mxu1 %v1694_v3  ;;  %2456 = vst [vmem:[#allocation26_spill] sm:$0xff] %v1903_v62  ;;  %v124_v2 = vperm.slane %v122_v0, 0 }
  0x2e   :  { %447 = vmatpush.msrb.mxu0 %v1768_v27  ;;  %488 = vmatpush.msrb.mxu2 %v1799_v40 }
  0x2f   :  { %353 = vmatpush.msra.mxu3 %v1758_v24  ;;  %1308 = vmatmul.msk.f32.gmra.mxu2 %vm130_vm0, %v1720_v12 }
  0x30   :  { %448 = vmatpush.msrb.mxu0 %v1776_v30  ;;  %469 = vmatpush.msrb.mxu1 %v1698_v5 }
  0x31   :  { %354 = vmatpush.msra.mxu3 %v1764_v26  ;;  %489 = vmatpush.msrb.mxu2 %v1807_v45 }
  0x32   :  { %449 = vmatpush.msrb.mxu0 %v1782_v32  ;;  %470 = vmatpush.msrb.mxu1 %v1703_v6 }
  0x33   :  { %355 = vmatpush.msra.mxu3 %v1770_v28  ;;  %1294 = vmatmul.msk.f32.gmra.mxu0 %vm130_vm0, %v1773_v29 }
  0x34   :  { %450 = vmatpush.msrb.mxu0 %v1790_v35  ;;  %1300 = vmatmul.msk.f32.gmra.mxu1 %vm130_vm0, %v1720_v12 }
  0x35   :  { %356 = vmatpush.msra.mxu3 %v1778_v31  ;;  %471 = vmatpush.msrb.mxu1 %v1708_v8 }
  0x36   :  { %451 = vmatpush.msrb.mxu0 %v1796_v38  ;;  %490 = vmatpush.msrb.mxu2 %v1817_v47 }
  0x37   :  { %357 = vmatpush.msra.mxu3 %v1786_v33  ;;  %472 = vmatpush.msrb.mxu1 %v1716_v11 }
  0x38   :  { %358 = vmatmul.f32.vlgmr.msra.gmra.mxu3 %v1634_v39  ;;  %452 = vmatpush.msrb.mxu0 %v1801_v42 }
  0x39   :  { %362 = vmatpush.msrb.mxu3 %v1792_v36  ;;  %491 = vmatpush.msrb.mxu2 %v1822_v48 }
  0x3a   :  { %453 = vmatpush.msrb.mxu0 %v1813_v46  ;;  %1309 = vmatmul.msk.f32.gmra.mxu2 %vm130_vm0, %v1747_v21 }
  0x3b   :  { %363 = vmatpush.msrb.mxu3 %v1799_v40  ;;  %1295 = vmatmul.msk.f32.gmra.mxu0 %vm130_vm0, %v1804_v43 }
  0x3c   :  { %576 = vmatpush.msra.mxu0 %v1691_v1  ;;  %473 = vmatpush.msrb.mxu1 %v1722_v13 }
  0x3d   :  { %364 = vmatpush.msrb.mxu3 %v1807_v45  ;;  %492 = vmatpush.msrb.mxu2 %v1828_v49 }
  0x3e   :  { %577 = vmatpush.msra.mxu0 %v1694_v3  ;;  %474 = vmatpush.msrb.mxu1 %v1728_v15 }
  0x3f   :  { %365 = vmatpush.msrb.mxu3 %v1817_v47  ;;  %1301 = vmatmul.msk.f32.gmra.mxu1 %vm130_vm0, %v1747_v21 }
  0x40   :  { %578 = vmatpush.msra.mxu0 %v1698_v5  ;;  %493 = vmatpush.msrb.mxu2 %v1836_v51 }
  0x41   :  { %366 = vmatpush.msrb.mxu3 %v1822_v48  ;;  %475 = vmatpush.msrb.mxu1 %v1736_v17 }
  0x42   :  { %579 = vmatpush.msra.mxu0 %v1703_v6  ;;  %494 = vmatpush.msrb.mxu2 %v1845_v52 }
  0x43   :  { %367 = vmatpush.msrb.mxu3 %v1828_v49  ;;  %1296 = vmatmul.msk.f32.gmra.mxu0 %vm130_vm0, %v1833_v50 }
  0x44   :  { %476 = vmatpush.msrb.mxu1 %v1742_v19  ;;  %580 = vmatpush.msra.mxu0 %v1708_v8 }
  0x45   :  { %368 = vmatpush.msrb.mxu3 %v1836_v51  ;;  %1310 = vmatmul.msk.f32.gmra.mxu2 %vm130_vm0, %v1773_v29 }
  0x46   :  { %477 = vmatpush.msrb.mxu1 %v1750_v22  ;;  %495 = vmatpush.msrb.mxu2 %v1851_v53 }
  0x47   :  { %369 = vmatpush.msrb.mxu3 %v1845_v52  ;;  %1302 = vmatmul.msk.f32.gmra.mxu1 %vm130_vm0, %v1773_v29 }
  0x48   :  { %478 = vmatpush.msrb.mxu1 %v1758_v24  ;;  %496 = vmatpush.msrb.mxu2 %v1857_v54 }
  0x49   :  { %370 = vmatpush.msrb.mxu3 %v1851_v53  ;;  %581 = vmatpush.msra.mxu0 %v1716_v11 }
  0x4a   :  { %479 = vmatpush.msrb.mxu1 %v1764_v26  ;;  %497 = vmatpush.msrb.mxu2 %v1865_v56 }
  0x4b   :  { %371 = vmatpush.msrb.mxu3 %v1857_v54  ;;  %1297 = vmatmul.msk.f32.gmra.mxu0 %vm130_vm0, %v1862_v55 }
  0x4c   :  { %480 = vmatpush.msrb.mxu1 %v1770_v28  ;;  %582 = vmatpush.msra.mxu0 %v1722_v13 }
  0x4d   :  { %372 = vmatpush.msrb.mxu3 %v1865_v56  ;;  %1311 = vmatmul.msk.f32.gmra.mxu2 %vm130_vm0, %v1804_v43 }
  0x4e   :  { %498 = vmatpush.msrb.mxu2 %v1874_v57  ;;  %481 = vmatpush.msrb.mxu1 %v1778_v31 }
  0x4f   :  { %373 = vmatpush.msrb.mxu3 %v1874_v57  ;;  %1303 = vmatmul.msk.f32.gmra.mxu1 %vm130_vm0, %v1804_v43 }
  0x50   :  { %499 = vmatpush.msrb.mxu2 %v1880_v58  ;;  %482 = vmatpush.msrb.mxu1 %v1786_v33 }
  0x51   :  { %374 = vmatpush.msrb.mxu3 %v1880_v58  ;;  %583 = vmatpush.msra.mxu0 %v1728_v15 }
  0x52   :  { %596 = vmatpush.msra.mxu1 %v1792_v36  ;;  %500 = vmatpush.msrb.mxu2 %v1886_v59 }
  0x53   :  { %375 = vmatpush.msrb.mxu3 %v1886_v59  ;;  %1298 = vmatmul.msk.f32.gmra.mxu0 %vm130_vm0, %v1891_v60 }
  0x54   :  { %597 = vmatpush.msra.mxu1 %v1799_v40  ;;  %584 = vmatpush.msra.mxu0 %v1736_v17 }
  0x55   :  { %376 = vmatpush.msrb.mxu3 %v1894_v61  ;;  %1312 = vmatmul.msk.f32.gmra.mxu2 %vm130_vm0, %v1833_v50 }
  0x56   :  { %501 = vmatpush.msrb.mxu2 %v1894_v61  ;;  %598 = vmatpush.msra.mxu1 %v1807_v45 }
  0x57   :  { %377 = vmatpush.msrb.mxu3 %v1903_v62  ;;  %585 = vmatpush.msra.mxu0 %v1742_v19 }
  0x58   :  { %378 = vmatmul.f32.vlgmr.msrb.gmra.mxu3 %v1634_v39  ;;  %1304 = vmatmul.msk.f32.gmra.mxu1 %vm130_vm0, %v1833_v50 }
  0x59   :  { %547 = vmatpush.msra.mxu3 %v1706_v7  ;;  %502 = vmatpush.msrb.mxu2 %v1903_v62 }
  0x5a   :  { %599 = vmatpush.msra.mxu1 %v1817_v47  ;;  %586 = vmatpush.msra.mxu0 %v1750_v22 }
  0x5b   :  { %548 = vmatpush.msra.mxu3 %v1711_v9  ;;  %454 = vmatmul.f32.vlgmr.msrb.gmra.mxu0 %v1634_v39 }
  0x5c   :  { %656 = vmatpush.msra.mxu2 %v1706_v7  ;;  %600 = vmatpush.msra.mxu1 %v1822_v48 }
  0x5d   :  { %549 = vmatpush.msra.mxu3 %v1714_v10  ;;  %1313 = vmatmul.msk.f32.gmra.mxu2 %vm130_vm0, %v1862_v55 }
  0x5e   :  { %657 = vmatpush.msra.mxu2 %v1711_v9  ;;  %601 = vmatpush.msra.mxu1 %v1828_v49 }
  0x5f   :  { %550 = vmatpush.msra.mxu3 %v1725_v14  ;;  %587 = vmatpush.msra.mxu0 %v1758_v24 }
  0x60   :  { %658 = vmatpush.msra.mxu2 %v1714_v10  ;;  %602 = vmatpush.msra.mxu1 %v1836_v51 }
  0x61   :  { %551 = vmatpush.msra.mxu3 %v1732_v16  ;;  %1305 = vmatmul.msk.f32.gmra.mxu1 %vm130_vm0, %v1862_v55 }
  0x62   :  { %659 = vmatpush.msra.mxu2 %v1725_v14  ;;  %603 = vmatpush.msra.mxu1 %v1845_v52 }
  0x63   :  { %552 = vmatpush.msra.mxu3 %v1738_v18  ;;  %588 = vmatpush.msra.mxu0 %v1764_v26 }
  0x64   :  { %660 = vmatpush.msra.mxu2 %v1732_v16  ;;  %604 = vmatpush.msra.mxu1 %v1851_v53 }
  0x65   :  { %553 = vmatpush.msra.mxu3 %v1744_v20  ;;  %589 = vmatpush.msra.mxu0 %v1770_v28 }
  0x66   :  { %1314 = vmatmul.msk.f32.gmra.mxu2 %vm130_vm0, %v1891_v60  ;;  %605 = vmatpush.msra.mxu1 %v1857_v54 }
  0x67   :  { %554 = vmatpush.msra.mxu3 %v1752_v23  ;;  %661 = vmatpush.msra.mxu2 %v1738_v18 }
  0x68   :  { %606 = vmatpush.msra.mxu1 %v1865_v56  ;;  %590 = vmatpush.msra.mxu0 %v1778_v31 }
  0x69   :  { %555 = vmatpush.msra.mxu3 %v1762_v25  ;;  %1306 = vmatmul.msk.f32.gmra.mxu1 %vm130_vm0, %v1891_v60 }
  0x6a   :  { %662 = vmatpush.msra.mxu2 %v1744_v20  ;;  %607 = vmatpush.msra.mxu1 %v1874_v57 }
  0x6b   :  { %556 = vmatpush.msra.mxu3 %v1768_v27  ;;  %591 = vmatpush.msra.mxu0 %v1786_v33 }
  0x6c   :  { %663 = vmatpush.msra.mxu2 %v1752_v23  ;;  %608 = vmatpush.msra.mxu1 %v1880_v58 }
  0x6d   :  { %557 = vmatpush.msra.mxu3 %v1776_v30  ;;  %705 = vmatpush.msrb.mxu0 %v1792_v36 }
  0x6e   :  { %664 = vmatpush.msra.mxu2 %v1762_v25  ;;  %609 = vmatpush.msra.mxu1 %v1886_v59 }
  0x6f   :  { %558 = vmatpush.msra.mxu3 %v1782_v32  ;;  %706 = vmatpush.msrb.mxu0 %v1799_v40 }
  0x70   :  { %665 = vmatpush.msra.mxu2 %v1768_v27  ;;  %610 = vmatpush.msra.mxu1 %v1894_v61 }
  0x71   :  { %559 = vmatpush.msra.mxu3 %v1790_v35  ;;  %707 = vmatpush.msrb.mxu0 %v1807_v45 }
  0x72   :  { %666 = vmatpush.msra.mxu2 %v1776_v30  ;;  %611 = vmatpush.msra.mxu1 %v1903_v62 }
  0x73   :  { %560 = vmatpush.msra.mxu3 %v1796_v38  ;;  %708 = vmatpush.msrb.mxu0 %v1817_v47 }
  0x74   :  { %667 = vmatpush.msra.mxu2 %v1782_v32 }
  0x75   :  { %561 = vmatpush.msra.mxu3 %v1801_v42  ;;  %709 = vmatpush.msrb.mxu0 %v1822_v48 }
  0x76   :  { %668 = vmatpush.msra.mxu2 %v1790_v35 }
  0x77   :  { %562 = vmatpush.msra.mxu3 %v1813_v46  ;;  %710 = vmatpush.msrb.mxu0 %v1828_v49 }
  0x78   :  { %669 = vmatpush.msra.mxu2 %v1796_v38 }
  0x79   :  { %685 = vmatpush.msrb.mxu3 %v1691_v1  ;;  %711 = vmatpush.msrb.mxu0 %v1836_v51 }
  0x7a   :  { %670 = vmatpush.msra.mxu2 %v1801_v42 }
  0x7b   :  { %686 = vmatpush.msrb.mxu3 %v1694_v3  ;;  %712 = vmatpush.msrb.mxu0 %v1845_v52 }
  0x7c   :  { %671 = vmatpush.msra.mxu2 %v1813_v46 }
  0x7d   :  { %687 = vmatpush.msrb.mxu3 %v1698_v5  ;;  %713 = vmatpush.msrb.mxu0 %v1851_v53 }
  0x7f   :  { %688 = vmatpush.msrb.mxu3 %v1703_v6  ;;  %714 = vmatpush.msrb.mxu0 %v1857_v54 }
  0x81   :  { %689 = vmatpush.msrb.mxu3 %v1708_v8  ;;  %715 = vmatpush.msrb.mxu0 %v1865_v56 }
  0x83   :  { %690 = vmatpush.msrb.mxu3 %v1716_v11  ;;  %716 = vmatpush.msrb.mxu0 %v1874_v57 }
  0x85   :  { %691 = vmatpush.msrb.mxu3 %v1722_v13  ;;  %717 = vmatpush.msrb.mxu0 %v1880_v58 }
  0x87   :  { %692 = vmatpush.msrb.mxu3 %v1728_v15  ;;  %718 = vmatpush.msrb.mxu0 %v1886_v59 }
  0x89   :  { %693 = vmatpush.msrb.mxu3 %v1736_v17  ;;  %719 = vmatpush.msrb.mxu0 %v1894_v61 }
  0x8b   :  { %694 = vmatpush.msrb.mxu3 %v1742_v19  ;;  %720 = vmatpush.msrb.mxu0 %v1903_v62 }
  0x8d   :  { %695 = vmatpush.msrb.mxu3 %v1750_v22 }
  0x8f   :  { %696 = vmatpush.msrb.mxu3 %v1758_v24 }
  0x91   :  { %697 = vmatpush.msrb.mxu3 %v1764_v26 }
  0x93   :  { %698 = vmatpush.msrb.mxu3 %v1770_v28 }
  0x95   :  { %699 = vmatpush.msrb.mxu3 %v1778_v31 }
  0x97   :  { %700 = vmatpush.msrb.mxu3 %v1786_v33 }
  0x98   :  { %v172_v63 = vpop.f32.mrf.mxu0 }
  0x99   :  { %v173_v41 = vadd.f32 %v172_v63, %v124_v2 }
  0xa0   :  { %v175_v4 = vpop.f32.mrf.mxu0 }
  0xa1   :  { %v2030_v12 = vadd.f32 %v175_v4, %v124_v2 }
  0xa3   :  { %2457 = vst [vmem:[#allocation27_spill] sm:$0xff] %v2030_v12 }
  0xa8   :  { %v178_v21 = vpop.f32.mrf.mxu0 }
  0xa9   :  { %v2032_v29 = vadd.f32 %v178_v21, %v124_v2 }
  0xab   :  { %2458 = vst [vmem:[#allocation28_spill] sm:$0xff] %v2032_v29 }
  0xb0   :  { %v181_v34 = vpop.f32.mrf.mxu0 }
  0xb1   :  { %v2034_v37 = vadd.f32 %v181_v34, %v124_v2 }
  0xb3   :  { %2459 = vst [vmem:[#allocation29_spill] sm:$0xff] %v2034_v37 }
  0xb8   :  { %v184_v39 = vpop.f32.mrf.mxu0 }
  0xb9   :  { %v2036_v43 = vadd.f32 %v184_v39, %v124_v2  ;;  %v2044_v39 = vperm.slane %v122_v0, 1 }
  0xbb   :  { %2460 = vst [vmem:[#allocation30_spill] sm:$0xff] %v2036_v43  ;;  %v359_v44 = vpop.f32.mrf.mxu3  ;;  %v213_v43 = vpop.f32.mrf.mxu1 }
  0xbc   :  { %v382_v50 = vadd.f32 %v359_v44, %v173_v41  ;;  %2464 = vst [vmem:[#allocation34_spill] sm:$0xff] %v2044_v39  ;;  %v214_v44 = vadd.f32 %v213_v43, %v2044_v39 }
  0xbe   :  { %v1315_v55 = vmul.f32 -1.442695, %v382_v50 }
  0xc0   :  { %1344 = vpow2.f32 %v1315_v55  ;;  %v187_v60 = vpop.f32.mrf.mxu0 }
  0xc1   :  { %v2038_v62 = vadd.f32 %v187_v60, %v124_v2 }
  0xc3   :  { %2461 = vst [vmem:[#allocation31_spill] sm:$0xff] %v2038_v62 }
  0xc6   :  { %v1345_v33 = vpop.eup %1344 }
  0xc7   :  { %v386_v4 = vadd.f32 1.0, %v1345_v33  ;;  %v2050_v33 = vld [vmem:[%s2427_s4] ss:$0 sm:$0xff] }
  0xc8   :  { %v190_v12 = vpop.f32.mrf.mxu0 }
  0xc9   :  { %1346 = vrcp.f32 %v386_v4  ;;  %v2040_v21 = vadd.f32 %v190_v12, %v124_v2  ;;  %vm392_vm2 = vweird.f32 %v386_v4 }
  0xcb   :  { %2462 = vst [vmem:[#allocation32_spill] sm:$0xff] %v2040_v21 }
  0xcf   :  { %v1347_v29 = vpop.eup %1346 }
  0xd0   :  { %v193_v34 = vpop.f32.mrf.mxu0  ;;  %v388_v63 = vmul.f32 %v1347_v29, %v386_v4  ;;  %vm393_vm1 = vweird.f32 %v1347_v29 }
  0xd1   :  { %v2042_v37 = vadd.f32 %v193_v34, %v124_v2  ;;  %v398_v2 = vand.u32 2147483648, %v386_v4  ;;  %vm394_vm3 = vmor %vm392_vm2, %vm393_vm1 }
  0xd2   :  { %v389_v41 = vsub.f32 1.0, %v388_v63 }
  0xd3   :  { %2463 = vst [vmem:[#allocation33_spill] sm:$0xff] %v2042_v37  ;;  %v396_v37 = vand.u32 2147483647, %v386_v4 }
  0xd4   :  { %v390_v50 = vmul.f32 %v1347_v29, %v389_v41  ;;  %v2053_v41 = vperm.slane %v122_v0, 2 }
  0xd5   :  { %vm397_vm4 = vcmp.eq.f32.partialorder %v396_v37, 8.507059e+37 }
  0xd6   :  { %v391_v12 = vadd.f32 %v1347_v29, %v390_v50 }
  0xd8   :  { %v455_v34 = vpop.f32.mrf.mxu0  ;;  %v395_v63 = vsel %vm394_vm3, %v1347_v29, %v391_v12 }
  0xd9   :  { %v456_v43 = vadd.f32 %v2050_v33, %v455_v34 }
  0xdb   :  { %v379_v55 = vpop.f32.mrf.mxu3 }
  0xdc   :  { %v402_v60 = vadd.f32 %v379_v55, %v214_v44  ;;  %v399_v44 = vor.u32 1.1754944e-38, %v398_v2  ;;  %v254_v55 = vpop.f32.mrf.mxu2 }
  0xdd   :  { %v255_v50 = vadd.f32 %v254_v55, %v2053_v41 }
  0xde   :  { %v1316_v62 = vmul.f32 -1.442695, %v402_v60  ;;  %v400_v21 = vsel %vm397_vm4, %v399_v44, %v395_v63 }
  0xdf   :  { %v458_v39 = vmul.f32 %v456_v43, %v400_v21 }
  0xe0   :  { %1348 = vpow2.f32 %v1316_v62 }
  0xe1   :  { %v459_v61 = vadd.f32 %v458_v39, %v255_v50  ;;  %v2468_v39 = vld [vmem:[#allocation20_spill] sm:$0xff]  ;;  %v216_v50 = vpop.f32.mrf.mxu1 }
  0xe6   :  { %v1349_v60 = vpop.eup %1348 }
  0xe7   :  { %v406_v46 = vadd.f32 1.0, %v1349_v60  ;;  %v2469_v60 = vld [vmem:[#allocation26_spill] sm:$0xff] }
  0xe9   :  { %1350 = vrcp.f32 %v406_v46  ;;  %v418_v29 = vand.u32 2147483648, %v406_v46  ;;  %v416_v0 = vand.u32 2147483647, %v406_v46  ;;  %vm412_vm6 = vweird.f32 %v406_v46 }
  0xea   :  { %1352 = vtanh.f32 %v459_v61  ;;  %v2467_v61 = vld [vmem:[#allocation23_spill] sm:$0xff] }
  0xeb   :  { %v419_v37 = vor.u32 1.1754944e-38, %v418_v29  ;;  %vm417_vm8 = vcmp.eq.f32.partialorder %v416_v0, 8.507059e+37 }
  0xef   :  { %v1351_v62 = vpop.eup %1350 }
  0xf0   :  { %v408_v4 = vmul.f32 %v1351_v62, %v406_v46  ;;  %vm413_vm5 = vweird.f32 %v1351_v62  ;;  %v1353_v34 = vpop.eup %1352  ;;  %v2466_v46 = vld [vmem:[#allocation25_spill] sm:$0xff] }
  0xf1   :  { %vm414_vm7 = vmor %vm412_vm6, %vm413_vm5  ;;  %v461_v63 = vsub.f32 0.0, %v1353_v34 }
  0xf2   :  { %v409_v31 = vsub.f32 1.0, %v408_v4  ;;  %v2109_v4 = vpop.f32.mrf.mxu1 }
  0xf3   :  { %2470 = vst [vmem:[#allocation35_spill] sm:$0xff] %v2109_v4 }
  0xf4   :  { %v410_v12 = vmul.f32 %v1351_v62, %v409_v31  ;;  %v2465_v31 = vld [vmem:[#allocation19_spill] sm:$0xff] }
  0xf6   :  { %v411_v2 = vadd.f32 %v1351_v62, %v410_v12 }
  0xf8   :  { %v415_v21 = vsel %vm414_vm7, %v1351_v62, %v411_v2  ;;  %v257_v62 = vpop.f32.mrf.mxu2 }
  0xf9   :  { %v420_v43 = vsel %vm417_vm8, %v419_v37, %v415_v21 }
  0xfa   :  { %v462_v44 = vmul.f32 %v461_v63, %v420_v43  ;;  %v2113_v12 = vpop.f32.mrf.mxu1 }
  0xfb   :  { %2472 = vst [vmem:[#allocation37_spill] sm:$0xff] %v2113_v12  ;;  %v2482_v12 = vld [vmem:[#allocation27_spill] sm:$0xff] }
  0xfc   :  { %v2056_v55 = vadd.f32 %v1353_v34, %v462_v44 }
  0xfe   :  { %483 = vmatmul.f32.vlgmr.msrb.gmra.mxu1 %v2056_v55  ;;  %503 = vmatmul.f32.vlgmr.msrb.gmra.mxu2 %v2056_v55 }
  0xff   :  { %563 = vmatmul.f32.vlgmr.msra.gmra.mxu3 %v2056_v55  ;;  %765 = vmatpush.msrb.mxu1 %v1706_v7 }
 0x100   :  { %794 = vmatpush.msrb.mxu2 %v1691_v1  ;;  %814 = vmatpush.msra.mxu3 %v1792_v36  ;;  %v2111_v29 = vpop.f32.mrf.mxu2 }
 0x101   :  { %766 = vmatpush.msrb.mxu1 %v1711_v9  ;;  %2471 = vst [vmem:[#allocation36_spill] sm:$0xff] %v2111_v29 }
 0x102   :  { %795 = vmatpush.msrb.mxu2 %v1694_v3  ;;  %815 = vmatpush.msra.mxu3 %v1799_v40  ;;  %v2117_v34 = vpop.f32.mrf.mxu1 }
 0x103   :  { %767 = vmatpush.msrb.mxu1 %v1714_v10  ;;  %2474 = vst [vmem:[#allocation39_spill] sm:$0xff] %v2117_v34 }
 0x104   :  { %796 = vmatpush.msrb.mxu2 %v1698_v5  ;;  %816 = vmatpush.msra.mxu3 %v1807_v45 }
 0x105   :  { %768 = vmatpush.msrb.mxu1 %v1725_v14 }
 0x106   :  { %797 = vmatpush.msrb.mxu2 %v1703_v6  ;;  %817 = vmatpush.msra.mxu3 %v1817_v47 }
 0x107   :  { %769 = vmatpush.msrb.mxu1 %v1732_v16 }
 0x108   :  { %798 = vmatpush.msrb.mxu2 %v1708_v8  ;;  %818 = vmatpush.msra.mxu3 %v1822_v48  ;;  %v2115_v0 = vpop.f32.mrf.mxu2 }
 0x109   :  { %770 = vmatpush.msrb.mxu1 %v1738_v18  ;;  %2473 = vst [vmem:[#allocation38_spill] sm:$0xff] %v2115_v0 }
 0x10a   :  { %799 = vmatpush.msrb.mxu2 %v1716_v11  ;;  %819 = vmatpush.msra.mxu3 %v1828_v49  ;;  %v2121_v37 = vpop.f32.mrf.mxu1 }
 0x10b   :  { %771 = vmatpush.msrb.mxu1 %v1744_v20  ;;  %2476 = vst [vmem:[#allocation41_spill] sm:$0xff] %v2121_v37 }
 0x10c   :  { %800 = vmatpush.msrb.mxu2 %v1722_v13  ;;  %820 = vmatpush.msra.mxu3 %v1836_v51 }
 0x10d   :  { %772 = vmatpush.msrb.mxu1 %v1752_v23 }
 0x10e   :  { %801 = vmatpush.msrb.mxu2 %v1728_v15  ;;  %821 = vmatpush.msra.mxu3 %v1845_v52 }
 0x10f   :  { %773 = vmatpush.msrb.mxu1 %v1762_v25 }
 0x110   :  { %802 = vmatpush.msrb.mxu2 %v1736_v17  ;;  %822 = vmatpush.msra.mxu3 %v1851_v53  ;;  %v2119_v2 = vpop.f32.mrf.mxu2 }
 0x111   :  { %774 = vmatpush.msrb.mxu1 %v1768_v27  ;;  %2475 = vst [vmem:[#allocation40_spill] sm:$0xff] %v2119_v2 }
 0x112   :  { %803 = vmatpush.msrb.mxu2 %v1742_v19  ;;  %823 = vmatpush.msra.mxu3 %v1857_v54  ;;  %v2125_v21 = vpop.f32.mrf.mxu1 }
 0x113   :  { %775 = vmatpush.msrb.mxu1 %v1776_v30  ;;  %2478 = vst [vmem:[#allocation43_spill] sm:$0xff] %v2125_v21 }
 0x114   :  { %804 = vmatpush.msrb.mxu2 %v1750_v22  ;;  %824 = vmatpush.msra.mxu3 %v1865_v56 }
 0x115   :  { %776 = vmatpush.msrb.mxu1 %v1782_v32 }
 0x116   :  { %805 = vmatpush.msrb.mxu2 %v1758_v24  ;;  %825 = vmatpush.msra.mxu3 %v1874_v57 }
 0x117   :  { %777 = vmatpush.msrb.mxu1 %v1790_v35 }
 0x118   :  { %806 = vmatpush.msrb.mxu2 %v1764_v26  ;;  %826 = vmatpush.msra.mxu3 %v1880_v58  ;;  %v2123_v63 = vpop.f32.mrf.mxu2 }
 0x119   :  { %778 = vmatpush.msrb.mxu1 %v1796_v38  ;;  %2477 = vst [vmem:[#allocation42_spill] sm:$0xff] %v2123_v63 }
 0x11a   :  { %807 = vmatpush.msrb.mxu2 %v1770_v28  ;;  %827 = vmatpush.msra.mxu3 %v1886_v59  ;;  %v2129_v44 = vpop.f32.mrf.mxu1 }
 0x11b   :  { %779 = vmatpush.msrb.mxu1 %v1801_v42  ;;  %2480 = vst [vmem:[#allocation45_spill] sm:$0xff] %v2129_v44 }
 0x11c   :  { %808 = vmatpush.msrb.mxu2 %v2465_v31  ;;  %828 = vmatpush.msra.mxu3 %v2466_v46 }
 0x11d   :  { %780 = vmatpush.msrb.mxu1 %v2467_v61 }
 0x11e   :  { %809 = vmatpush.msrb.mxu2 %v2468_v39  ;;  %829 = vmatpush.msra.mxu3 %v2469_v60  ;;  %v2483_v39 = vld [vmem:[#allocation34_spill] sm:$0xff] }
 0x11f   :  { %v217_v34 = vadd.f32 %v216_v50, %v2483_v39 }
 0x120   :  { %v2127_v43 = vpop.f32.mrf.mxu2 }
 0x121   :  { %2479 = vst [vmem:[#allocation44_spill] sm:$0xff] %v2127_v43 }
 0x128   :  { %v2131_v4 = vpop.f32.mrf.mxu2 }
 0x129   :  { %2481 = vst [vmem:[#allocation46_spill] sm:$0xff] %v2131_v4 }
 0x17b   :  { %v484_v29 = vpop.f32.mrf.mxu1 }
 0x17c   :  { %v507_v60 = vadd.f32 %v484_v29, %v2482_v12 }
 0x17e   :  { %v1317_v0 = vmul.f32 -1.442695, %v507_v60 }
 0x180   :  { %1354 = vpow2.f32 %v1317_v0 }
 0x181   :  { %v504_v2 = vpop.f32.mrf.mxu2 }
 0x182   :  { %v527_v61 = vadd.f32 %v504_v2, %v217_v34  ;;  %v564_v50 = vpop.f32.mrf.mxu3 }
 0x183   :  { %v565_v2 = vadd.f32 %v2050_v33, %v564_v50 }
 0x184   :  { %v1318_v37 = vmul.f32 -1.442695, %v527_v61 }
 0x186   :  { %v1355_v46 = vpop.eup %1354  ;;  %1356 = vpow2.f32 %v1318_v37 }
 0x187   :  { %v511_v63 = vadd.f32 1.0, %v1355_v46 }
 0x189   :  { %1358 = vrcp.f32 %v511_v63  ;;  %v523_v42 = vand.u32 2147483648, %v511_v63  ;;  %v521_v60 = vand.u32 2147483647, %v511_v63  ;;  %vm517_vm10 = vweird.f32 %v511_v63 }
 0x18b   :  { %v524_v61 = vor.u32 1.1754944e-38, %v523_v42  ;;  %vm522_vm12 = vcmp.eq.f32.partialorder %v521_v60, 8.507059e+37 }
 0x18c   :  { %v1357_v21 = vpop.eup %1356 }
 0x18d   :  { %v531_v43 = vadd.f32 1.0, %v1357_v21  ;;  %v258_v21 = vadd.f32 %v257_v62, %v2053_v41 }
 0x18f   :  { %v1359_v31 = vpop.eup %1358  ;;  %1360 = vrcp.f32 %v531_v43  ;;  %v543_v38 = vand.u32 2147483648, %v531_v43  ;;  %vm537_vm14 = vweird.f32 %v531_v43 }
 0x190   :  { %v513_v44 = vmul.f32 %v1359_v31, %v511_v63  ;;  %vm518_vm9 = vweird.f32 %v1359_v31 }
 0x191   :  { %vm519_vm11 = vmor %vm517_vm10, %vm518_vm9 }
 0x192   :  { %v514_v4 = vsub.f32 1.0, %v513_v44 }
 0x194   :  { %v515_v59 = vmul.f32 %v1359_v31, %v514_v4 }
 0x195   :  { %v1361_v29 = vpop.eup %1360 }
 0x196   :  { %v533_v12 = vmul.f32 %v1361_v29, %v531_v43  ;;  %v516_v0 = vadd.f32 %v1359_v31, %v515_v59  ;;  %vm538_vm13 = vweird.f32 %v1361_v29  ;;  %v541_v59 = vand.u32 2147483647, %v531_v43 }
 0x197   :  { %vm539_vm15 = vmor %vm537_vm14, %vm538_vm13 }
 0x198   :  { %v534_v34 = vsub.f32 1.0, %v533_v12  ;;  %v520_v46 = vsel %vm519_vm11, %v1359_v31, %v516_v0  ;;  %v544_v12 = vor.u32 1.1754944e-38, %v543_v38  ;;  %vm542_vm0 = vcmp.eq.f32.partialorder %v541_v59, 8.507059e+37 }
 0x199   :  { %v525_v37 = vsel %vm522_vm12, %v524_v61, %v520_v46 }
 0x19a   :  { %v567_v44 = vmul.f32 %v565_v2, %v525_v37  ;;  %v535_v39 = vmul.f32 %v1361_v29, %v534_v34 }
 0x19c   :  { %v568_v4 = vadd.f32 %v567_v44, %v258_v21  ;;  %v536_v28 = vadd.f32 %v1361_v29, %v535_v39  ;;  %v2496_v21 = vld [vmem:[#allocation36_spill] sm:$0xff] }
 0x19d   :  { %v261_v44 = vadd.f32 %v2496_v21, %v2053_v41 }
 0x19e   :  { %1362 = vtanh.f32 %v568_v4  ;;  %v540_v63 = vsel %vm539_vm15, %v1361_v29, %v536_v28 }
 0x19f   :  { %v545_v60 = vsel %vm542_vm0, %v544_v12, %v540_v63 }
 0x1a4   :  { %v1363_v42 = vpop.eup %1362 }
 0x1a5   :  { %v570_v31 = vsub.f32 %v2056_v55, %v1363_v42 }
 0x1a7   :  { %v571_v50 = vmul.f32 %v570_v31, %v545_v60 }
 0x1a9   :  { %v2138_v0 = vadd.f32 %v1363_v42, %v571_v50 }
 0x1ab   :  { %592 = vmatmul.f32.vlgmr.msra.gmra.mxu0 %v2138_v0  ;;  %612 = vmatmul.f32.vlgmr.msra.gmra.mxu1 %v2138_v0 }
 0x1ac   :  { %672 = vmatmul.f32.vlgmr.msra.gmra.mxu2 %v2138_v0  ;;  %874 = vmatpush.msra.mxu0 %v1706_v7  ;;  %v2488_v7 = vld [vmem:[#allocation19_spill] sm:$0xff] }
 0x1ad   :  { %903 = vmatpush.msra.mxu1 %v1691_v1  ;;  %923 = vmatpush.msra.mxu2 %v1792_v36  ;;  %v2484_v1 = vld [vmem:[#allocation21_spill] sm:$0xff] }
 0x1ae   :  { %875 = vmatpush.msra.mxu0 %v1711_v9  ;;  %v2490_v9 = vld [vmem:[#allocation23_spill] sm:$0xff] }
 0x1af   :  { %904 = vmatpush.msra.mxu1 %v1694_v3  ;;  %924 = vmatpush.msra.mxu2 %v1799_v40  ;;  %v2485_v3 = vld [vmem:[#allocation18_spill] sm:$0xff] }
 0x1b0   :  { %876 = vmatpush.msra.mxu0 %v1714_v10  ;;  %v2491_v10 = vld [vmem:[#allocation20_spill] sm:$0xff] }
 0x1b1   :  { %905 = vmatpush.msra.mxu1 %v1698_v5  ;;  %925 = vmatpush.msra.mxu2 %v1807_v45  ;;  %v2486_v5 = vld [vmem:[#allocation24_spill] sm:$0xff] }
 0x1b2   :  { %877 = vmatpush.msra.mxu0 %v1725_v14  ;;  %v2494_v14 = vld [vmem:[#allocation35_spill] sm:$0xff] }
 0x1b3   :  { %906 = vmatpush.msra.mxu1 %v1703_v6  ;;  %926 = vmatpush.msra.mxu2 %v1817_v47  ;;  %v2487_v6 = vld [vmem:[#allocation22_spill] sm:$0xff] }
 0x1b4   :  { %878 = vmatpush.msra.mxu0 %v1732_v16 }
 0x1b5   :  { %907 = vmatpush.msra.mxu1 %v1708_v8  ;;  %927 = vmatpush.msra.mxu2 %v1822_v48  ;;  %v2489_v8 = vld [vmem:[#allocation25_spill] sm:$0xff] }
 0x1b6   :  { %879 = vmatpush.msra.mxu0 %v1738_v18  ;;  %v2495_v18 = vld [vmem:[#allocation28_spill] sm:$0xff] }
 0x1b7   :  { %908 = vmatpush.msra.mxu1 %v1716_v11  ;;  %928 = vmatpush.msra.mxu2 %v1828_v49  ;;  %v2492_v11 = vld [vmem:[#allocation26_spill] sm:$0xff] }
 0x1b8   :  { %880 = vmatpush.msra.mxu0 %v1744_v20 }
 0x1b9   :  { %909 = vmatpush.msra.mxu1 %v1722_v13  ;;  %929 = vmatpush.msra.mxu2 %v1836_v51  ;;  %v2493_v13 = vld [vmem:[#allocation34_spill] sm:$0xff] }
 0x1ba   :  { %881 = vmatpush.msra.mxu0 %v1752_v23 }
 0x1bb   :  { %910 = vmatpush.msra.mxu1 %v1728_v15  ;;  %930 = vmatpush.msra.mxu2 %v1845_v52  ;;  %v220_v15 = vadd.f32 %v2494_v14, %v2493_v13  ;;  %v2206_v14 = vld [vmem:[#allocation9 + $0x168] sm:$0xff] }
 0x1bc   :  { %882 = vmatpush.msra.mxu0 %v1762_v25 }
 0x1bd   :  { %911 = vmatpush.msra.mxu1 %v1736_v17  ;;  %931 = vmatpush.msra.mxu2 %v1851_v53 }
 0x1be   :  { %883 = vmatpush.msra.mxu0 %v1768_v27 }
 0x1bf   :  { %912 = vmatpush.msra.mxu1 %v1742_v19  ;;  %932 = vmatpush.msra.mxu2 %v1857_v54 }
 0x1c0   :  { %884 = vmatpush.msra.mxu0 %v1776_v30 }
 0x1c1   :  { %913 = vmatpush.msra.mxu1 %v1750_v22  ;;  %933 = vmatpush.msra.mxu2 %v1865_v56 }
 0x1c2   :  { %885 = vmatpush.msra.mxu0 %v1782_v32 }
 0x1c3   :  { %914 = vmatpush.msra.mxu1 %v1758_v24  ;;  %934 = vmatpush.msra.mxu2 %v1874_v57 }
 0x1c4   :  { %886 = vmatpush.msra.mxu0 %v1790_v35 }
 0x1c5   :  { %915 = vmatpush.msra.mxu1 %v1764_v26  ;;  %935 = vmatpush.msra.mxu2 %v1880_v58 }
 0x1c6   :  { %887 = vmatpush.msra.mxu0 %v2484_v1 }
 0x1c7   :  { %916 = vmatpush.msra.mxu1 %v2485_v3  ;;  %936 = vmatpush.msra.mxu2 %v2486_v5 }
 0x1c8   :  { %888 = vmatpush.msra.mxu0 %v2487_v6 }
 0x1c9   :  { %917 = vmatpush.msra.mxu1 %v2488_v7  ;;  %937 = vmatpush.msra.mxu2 %v2489_v8 }
 0x1ca   :  { %889 = vmatpush.msra.mxu0 %v2490_v9 }
 0x1cb   :  { %918 = vmatpush.msra.mxu1 %v2491_v10  ;;  %938 = vmatpush.msra.mxu2 %v2492_v11  ;;  %v2203_v10 = vld [vmem:[#allocation9 + $0x178] sm:$0xff] }
 0x228   :  { %v593_v16 = vpop.f32.mrf.mxu0  ;;  %v613_v17 = vpop.f32.mrf.mxu1 }
 0x229   :  { %v616_v19 = vadd.f32 %v593_v16, %v2495_v18  ;;  %v636_v20 = vadd.f32 %v613_v17, %v220_v15  ;;  %v2213_v15 = vld [vmem:[#allocation9 + $0x150] sm:$0xff]  ;;  %v2217_v16 = vld [vmem:[#allocation9 + $0x148] sm:$0xff]  ;;  %v2220_v17 = vld [vmem:[#allocation9 + $0x138] sm:$0xff] }
 0x22a   :  { %v2227_v18 = vld [vmem:[#allocation9 + $0x120] sm:$0xff] }
 0x22b   :  { %v1319_v22 = vmul.f32 -1.442695, %v616_v19  ;;  %v1320_v23 = vmul.f32 -1.442695, %v636_v20  ;;  %v2234_v19 = vld [vmem:[#allocation9 + $0x108] sm:$0xff]  ;;  %v2241_v20 = vld [vmem:[#allocation9 + $0xf0] sm:$0xff] }
 0x22d   :  { %1364 = vpow2.f32 %v1319_v22  ;;  %v2248_v22 = vld [vmem:[#allocation9 + $0xd8] sm:$0xff] }
 0x22e   :  { %1366 = vpow2.f32 %v1320_v23  ;;  %v2255_v23 = vld [vmem:[#allocation9 + $0xc0] sm:$0xff] }
 0x22f   :  { %v673_v43 = vpop.f32.mrf.mxu2 }
 0x230   :  { %v674_v2 = vadd.f32 %v2050_v33, %v673_v43 }
 0x233   :  { %v1365_v24 = vpop.eup %1364 }
 0x234   :  { %v1367_v25 = vpop.eup %1366  ;;  %v620_v26 = vadd.f32 1.0, %v1365_v24  ;;  %v2262_v24 = vld [vmem:[#allocation9 + $0xa8] sm:$0xff] }
 0x235   :  { %v640_v27 = vadd.f32 1.0, %v1367_v25  ;;  %v2269_v25 = vld [vmem:[#allocation9 + $0x90] sm:$0xff] }
 0x236   :  { %1368 = vrcp.f32 %v620_v26  ;;  %v632_v55 = vand.u32 2147483648, %v620_v26  ;;  %v630_v62 = vand.u32 2147483647, %v620_v26  ;;  %vm626_vm2 = vweird.f32 %v620_v26 }
 0x237   :  { %1370 = vrcp.f32 %v640_v27  ;;  %v652_v12 = vand.u32 2147483648, %v640_v27  ;;  %vm646_vm6 = vweird.f32 %v640_v27  ;;  %v650_v31 = vand.u32 2147483647, %v640_v27 }
 0x238   :  { %v633_v34 = vor.u32 1.1754944e-38, %v632_v55  ;;  %vm631_vm4 = vcmp.eq.f32.partialorder %v630_v62, 8.507059e+37 }
 0x239   :  { %v653_v1 = vor.u32 1.1754944e-38, %v652_v12  ;;  %vm651_vm8 = vcmp.eq.f32.partialorder %v650_v31, 8.507059e+37 }
 0x23c   :  { %v1369_v28 = vpop.eup %1368 }
 0x23d   :  { %v1371_v30 = vpop.eup %1370  ;;  %v622_v32 = vmul.f32 %v1369_v28, %v620_v26  ;;  %vm627_vm1 = vweird.f32 %v1369_v28  ;;  %v2276_v26 = vld [vmem:[#allocation9 + $0x78] sm:$0xff] }
 0x23e   :  { %v642_v38 = vmul.f32 %v1371_v30, %v640_v27  ;;  %vm628_vm3 = vmor %vm626_vm2, %vm627_vm1  ;;  %vm647_vm5 = vweird.f32 %v1371_v30  ;;  %v2283_v27 = vld [vmem:[#allocation9 + $0x60] sm:$0xff] }
 0x23f   :  { %v623_v35 = vsub.f32 1.0, %v622_v32  ;;  %vm648_vm7 = vmor %vm646_vm6, %vm647_vm5  ;;  %v2304_v32 = vld [vmem:[#allocation9 + $0x18] sm:$0xff] }
 0x240   :  { %v643_v61 = vsub.f32 1.0, %v642_v38 }
 0x241   :  { %v624_v39 = vmul.f32 %v1369_v28, %v623_v35  ;;  %v2311_v35 = vld [vmem:[#allocation9] sm:$0xff] }
 0x242   :  { %v644_v59 = vmul.f32 %v1371_v30, %v643_v61 }
 0x243   :  { %v625_v29 = vadd.f32 %v1369_v28, %v624_v39 }
 0x244   :  { %v645_v42 = vadd.f32 %v1371_v30, %v644_v59 }
 0x245   :  { %v629_v46 = vsel %vm628_vm3, %v1369_v28, %v625_v29  ;;  %v2290_v28 = vld [vmem:[#allocation9 + $0x48] sm:$0xff] }
 0x246   :  { %v634_v37 = vsel %vm631_vm4, %v633_v34, %v629_v46  ;;  %v649_v60 = vsel %vm648_vm7, %v1371_v30, %v645_v42  ;;  %v2297_v30 = vld [vmem:[#allocation9 + $0x30] sm:$0xff]  ;;  %v2498_v29 = vld [vmem:[#allocation29_spill] sm:$0xff] }
 0x247   :  { %v676_v4 = vmul.f32 %v674_v2, %v634_v37  ;;  %v654_v6 = vsel %vm651_vm8, %v653_v1, %v649_v60 }
 0x249   :  { %v677_v63 = vadd.f32 %v676_v4, %v261_v44 }
 0x24b   :  { %1372 = vtanh.f32 %v677_v63 }
 0x251   :  { %v1373_v50 = vpop.eup %1372 }
 0x252   :  { %v679_v3 = vsub.f32 %v2138_v0, %v1373_v50  ;;  %v2210_v0 = vld [vmem:[#allocation9 + $0x160] sm:$0xff] }
 0x254   :  { %v680_v7 = vmul.f32 %v679_v3, %v654_v6 }
 0x256   :  { %v2198_v9 = vadd.f32 %v1373_v50, %v680_v7 }
 0x258   :  { %701 = vmatmul.f32.vlgmr.msrb.gmra.mxu3 %v2198_v9  ;;  %721 = vmatmul.f32.vlgmr.msrb.gmra.mxu0 %v2198_v9 }
 0x259   :  { %781 = vmatmul.f32.vlgmr.msrb.gmra.mxu1 %v2198_v9  ;;  %983 = vmatpush.msrb.mxu3 %v2203_v10 }
 0x25a   :  { %1012 = vmatpush.msrb.mxu0 %v2206_v14  ;;  %1032 = vmatpush.msrb.mxu1 %v1792_v36  ;;  %v2224_v36 = vld [vmem:[#allocation9 + $0x130] sm:$0xff] }
 0x25b   :  { %984 = vmatpush.msrb.mxu3 %v2210_v0 }
 0x25c   :  { %1013 = vmatpush.msrb.mxu0 %v2213_v15  ;;  %1033 = vmatpush.msrb.mxu1 %v1799_v40  ;;  %v2231_v40 = vld [vmem:[#allocation9 + $0x118] sm:$0xff] }
 0x25d   :  { %985 = vmatpush.msrb.mxu3 %v2217_v16 }
 0x25e   :  { %1014 = vmatpush.msrb.mxu0 %v2220_v17  ;;  %1034 = vmatpush.msrb.mxu1 %v1807_v45  ;;  %v2238_v45 = vld [vmem:[#allocation9 + $0x100] sm:$0xff] }
 0x25f   :  { %986 = vmatpush.msrb.mxu3 %v2224_v36 }
 0x260   :  { %1015 = vmatpush.msrb.mxu0 %v2227_v18  ;;  %1035 = vmatpush.msrb.mxu1 %v1817_v47  ;;  %v2245_v47 = vld [vmem:[#allocation9 + $0xe8] sm:$0xff] }
 0x261   :  { %987 = vmatpush.msrb.mxu3 %v2231_v40 }
 0x262   :  { %1016 = vmatpush.msrb.mxu0 %v2234_v19  ;;  %1036 = vmatpush.msrb.mxu1 %v1822_v48  ;;  %v2252_v48 = vld [vmem:[#allocation9 + $0xd0] sm:$0xff] }
 0x263   :  { %988 = vmatpush.msrb.mxu3 %v2238_v45 }
 0x264   :  { %1017 = vmatpush.msrb.mxu0 %v2241_v20  ;;  %1037 = vmatpush.msrb.mxu1 %v1828_v49  ;;  %v2259_v49 = vld [vmem:[#allocation9 + $0xb8] sm:$0xff] }
 0x265   :  { %989 = vmatpush.msrb.mxu3 %v2245_v47 }
 0x266   :  { %1018 = vmatpush.msrb.mxu0 %v2248_v22  ;;  %1038 = vmatpush.msrb.mxu1 %v1836_v51  ;;  %v2266_v51 = vld [vmem:[#allocation9 + $0xa0] sm:$0xff] }
 0x267   :  { %990 = vmatpush.msrb.mxu3 %v2252_v48 }
 0x268   :  { %1019 = vmatpush.msrb.mxu0 %v2255_v23  ;;  %1039 = vmatpush.msrb.mxu1 %v1845_v52  ;;  %v2273_v52 = vld [vmem:[#allocation9 + $0x88] sm:$0xff] }
 0x269   :  { %991 = vmatpush.msrb.mxu3 %v2259_v49 }
 0x26a   :  { %1020 = vmatpush.msrb.mxu0 %v2262_v24  ;;  %1040 = vmatpush.msrb.mxu1 %v1851_v53  ;;  %v2280_v53 = vld [vmem:[#allocation9 + $0x70] sm:$0xff] }
 0x26b   :  { %992 = vmatpush.msrb.mxu3 %v2266_v51 }
 0x26c   :  { %1021 = vmatpush.msrb.mxu0 %v2269_v25  ;;  %1041 = vmatpush.msrb.mxu1 %v1857_v54  ;;  %v2287_v54 = vld [vmem:[#allocation9 + $0x58] sm:$0xff] }
 0x26d   :  { %993 = vmatpush.msrb.mxu3 %v2273_v52 }
 0x26e   :  { %1022 = vmatpush.msrb.mxu0 %v2276_v26  ;;  %1042 = vmatpush.msrb.mxu1 %v1865_v56  ;;  %v2294_v56 = vld [vmem:[#allocation9 + $0x40] sm:$0xff] }
 0x26f   :  { %994 = vmatpush.msrb.mxu3 %v2280_v53 }
 0x270   :  { %1023 = vmatpush.msrb.mxu0 %v2283_v27  ;;  %1043 = vmatpush.msrb.mxu1 %v1874_v57  ;;  %v2301_v57 = vld [vmem:[#allocation9 + $0x28] sm:$0xff] }
 0x271   :  { %995 = vmatpush.msrb.mxu3 %v2287_v54 }
 0x272   :  { %1024 = vmatpush.msrb.mxu0 %v2290_v28  ;;  %1044 = vmatpush.msrb.mxu1 %v1880_v58  ;;  %v2308_v58 = vld [vmem:[#allocation9 + $0x10] sm:$0xff] }
 0x273   :  { %996 = vmatpush.msrb.mxu3 %v2294_v56 }
 0x274   :  { %1025 = vmatpush.msrb.mxu0 %v2297_v30  ;;  %1045 = vmatpush.msrb.mxu1 %v2486_v5  ;;  %v2497_v5 = vld [vmem:[#allocation37_spill] sm:$0xff] }
 0x275   :  { %997 = vmatpush.msrb.mxu3 %v2301_v57  ;;  %v223_v38 = vadd.f32 %v2497_v5, %v2493_v13  ;;  %v2499_v5 = vld [vmem:[#allocation38_spill] sm:$0xff] }
 0x276   :  { %1026 = vmatpush.msrb.mxu0 %v2304_v32  ;;  %1046 = vmatpush.msrb.mxu1 %v2489_v8 }
 0x277   :  { %998 = vmatpush.msrb.mxu3 %v2308_v58 }
 0x278   :  { %1027 = vmatpush.msrb.mxu0 %v2311_v35  ;;  %1047 = vmatpush.msrb.mxu1 %v2492_v11 }
 0x2d5   :  { %v722_v55 = vpop.f32.mrf.mxu0 }
 0x2d6   :  { %v745_v39 = vadd.f32 %v722_v55, %v223_v38  ;;  %v782_v31 = vpop.f32.mrf.mxu1  ;;  %v264_v38 = vadd.f32 %v2499_v5, %v2053_v41 }
 0x2d7   :  { %v783_v3 = vadd.f32 %v2050_v33, %v782_v31 }
 0x2d8   :  { %v1322_v62 = vmul.f32 -1.442695, %v745_v39 }
 0x2da   :  { %1374 = vpow2.f32 %v1322_v62 }
 0x2db   :  { %v702_v43 = vpop.f32.mrf.mxu3 }
 0x2dc   :  { %v725_v61 = vadd.f32 %v702_v43, %v2498_v29 }
 0x2de   :  { %v1321_v8 = vmul.f32 -1.442695, %v725_v61 }
 0x2e0   :  { %1376 = vpow2.f32 %v1321_v8  ;;  %v1375_v34 = vpop.eup %1374 }
 0x2e1   :  { %v749_v2 = vadd.f32 1.0, %v1375_v34 }
 0x2e3   :  { %v761_v29 = vand.u32 2147483648, %v749_v2  ;;  %vm755_vm14 = vweird.f32 %v749_v2  ;;  %v759_v61 = vand.u32 2147483647, %v749_v2 }
 0x2e5   :  { %vm760_vm0 = vcmp.eq.f32.partialorder %v759_v61, 8.507059e+37 }
 0x2e6   :  { %v1377_v46 = vpop.eup %1376 }
 0x2e7   :  { %v729_v37 = vadd.f32 1.0, %v1377_v46  ;;  %v762_v46 = vor.u32 1.1754944e-38, %v761_v29 }
 0x2e9   :  { %1378 = vrcp.f32 %v729_v37  ;;  %v741_v63 = vand.u32 2147483648, %v729_v37  ;;  %v739_v12 = vand.u32 2147483647, %v729_v37  ;;  %vm735_vm10 = vweird.f32 %v729_v37 }
 0x2ea   :  { %1380 = vrcp.f32 %v749_v2 }
 0x2eb   :  { %v742_v1 = vor.u32 1.1754944e-38, %v741_v63  ;;  %vm740_vm12 = vcmp.eq.f32.partialorder %v739_v12, 8.507059e+37 }
 0x2ef   :  { %v1379_v21 = vpop.eup %1378 }
 0x2f0   :  { %v1381_v11 = vpop.eup %1380  ;;  %v731_v44 = vmul.f32 %v1379_v21, %v729_v37  ;;  %vm736_vm9 = vweird.f32 %v1379_v21 }
 0x2f1   :  { %v751_v59 = vmul.f32 %v1381_v11, %v749_v2  ;;  %vm737_vm11 = vmor %vm735_vm10, %vm736_vm9  ;;  %vm756_vm13 = vweird.f32 %v1381_v11  ;;  %v1456_v2 = vld [vmem:[#allocation9 + $0x170] sm:$0xff] }
 0x2f2   :  { %v732_v4 = vsub.f32 1.0, %v731_v44  ;;  %vm757_vm15 = vmor %vm755_vm14, %vm756_vm13 }
 0x2f3   :  { %v752_v50 = vsub.f32 1.0, %v751_v59  ;;  %v1459_v59 = vld [vmem:[#allocation9 + $0x128] sm:$0xff] }
 0x2f4   :  { %v733_v42 = vmul.f32 %v1379_v21, %v732_v4 }
 0x2f5   :  { %v753_v39 = vmul.f32 %v1381_v11, %v752_v50 }
 0x2f6   :  { %v734_v60 = vadd.f32 %v1379_v21, %v733_v42 }
 0x2f7   :  { %v754_v43 = vadd.f32 %v1381_v11, %v753_v39 }
 0x2f8   :  { %v738_v6 = vsel %vm737_vm11, %v1379_v21, %v734_v60 }
 0x2f9   :  { %v743_v7 = vsel %vm740_vm12, %v742_v1, %v738_v6  ;;  %v758_v8 = vsel %vm757_vm15, %v1381_v11, %v754_v43  ;;  %v1458_v11 = vld [vmem:[#allocation9 + $0x140] sm:$0xff] }
 0x2fa   :  { %v785_v55 = vmul.f32 %v783_v3, %v743_v7  ;;  %v763_v21 = vsel %vm760_vm0, %v762_v46, %v758_v8 }
 0x2fc   :  { %v786_v62 = vadd.f32 %v785_v55, %v264_v38 }
 0x2fe   :  { %1382 = vtanh.f32 %v786_v62 }
 0x304   :  { %v1383_v34 = vpop.eup %1382 }
 0x305   :  { %v788_v37 = vsub.f32 %v2198_v9, %v1383_v34  ;;  %v1457_v9 = vld [vmem:[#allocation9 + $0x158] sm:$0xff] }
 0x307   :  { %v789_v44 = vmul.f32 %v788_v37, %v763_v21 }
 0x309   :  { %v2322_v4 = vadd.f32 %v1383_v34, %v789_v44 }
 0x30b   :  { %810 = vmatmul.f32.vlgmr.msrb.gmra.mxu2 %v2322_v4  ;;  %830 = vmatmul.f32.vlgmr.msra.gmra.mxu3 %v2322_v4 }
 0x30c   :  { %890 = vmatmul.f32.vlgmr.msra.gmra.mxu0 %v2322_v4  ;;  %1092 = vmatpush.msrb.mxu2 %v2203_v10 }
 0x30d   :  { %1121 = vmatpush.msra.mxu3 %v2206_v14  ;;  %1141 = vmatpush.msra.mxu0 %v1456_v2  ;;  %v1460_v14 = vld [vmem:[#allocation9 + $0x110] sm:$0xff]  ;;  %v2502_v2 = vld [vmem:[#allocation40_spill] sm:$0xff] }
 0x30e   :  { %1093 = vmatpush.msrb.mxu2 %v2210_v0 }
 0x30f   :  { %1122 = vmatpush.msra.mxu3 %v2213_v15  ;;  %1142 = vmatpush.msra.mxu0 %v1457_v9  ;;  %v1461_v15 = vld [vmem:[#allocation9 + $0xf8] sm:$0xff]  ;;  %v267_v9 = vadd.f32 %v2502_v2, %v2053_v41 }
 0x310   :  { %1094 = vmatpush.msrb.mxu2 %v2217_v16 }
 0x311   :  { %1123 = vmatpush.msra.mxu3 %v2220_v17  ;;  %1143 = vmatpush.msra.mxu0 %v1458_v11  ;;  %v1462_v17 = vld [vmem:[#allocation9 + $0xe0] sm:$0xff] }
 0x312   :  { %1095 = vmatpush.msrb.mxu2 %v2224_v36 }
 0x313   :  { %1124 = vmatpush.msra.mxu3 %v2227_v18  ;;  %1144 = vmatpush.msra.mxu0 %v1459_v59  ;;  %v1463_v18 = vld [vmem:[#allocation9 + $0xc8] sm:$0xff] }
 0x314   :  { %1096 = vmatpush.msrb.mxu2 %v2231_v40 }
 0x315   :  { %1125 = vmatpush.msra.mxu3 %v2234_v19  ;;  %1145 = vmatpush.msra.mxu0 %v1460_v14  ;;  %v1464_v19 = vld [vmem:[#allocation9 + $0xb0] sm:$0xff] }
 0x316   :  { %1097 = vmatpush.msrb.mxu2 %v2238_v45 }
 0x317   :  { %1126 = vmatpush.msra.mxu3 %v2241_v20  ;;  %1146 = vmatpush.msra.mxu0 %v1461_v15  ;;  %v1465_v20 = vld [vmem:[#allocation9 + $0x98] sm:$0xff] }
 0x318   :  { %1098 = vmatpush.msrb.mxu2 %v2245_v47 }
 0x319   :  { %1127 = vmatpush.msra.mxu3 %v2248_v22  ;;  %1147 = vmatpush.msra.mxu0 %v1462_v17  ;;  %v1466_v22 = vld [vmem:[#allocation9 + $0x80] sm:$0xff] }
 0x31a   :  { %1099 = vmatpush.msrb.mxu2 %v2252_v48 }
 0x31b   :  { %1128 = vmatpush.msra.mxu3 %v2255_v23  ;;  %1148 = vmatpush.msra.mxu0 %v1463_v18  ;;  %v1467_v23 = vld [vmem:[#allocation9 + $0x68] sm:$0xff] }
 0x31c   :  { %1100 = vmatpush.msrb.mxu2 %v2259_v49 }
 0x31d   :  { %1129 = vmatpush.msra.mxu3 %v2262_v24  ;;  %1149 = vmatpush.msra.mxu0 %v1464_v19  ;;  %v1468_v24 = vld [vmem:[#allocation9 + $0x50] sm:$0xff] }
 0x31e   :  { %1101 = vmatpush.msrb.mxu2 %v2266_v51 }
 0x31f   :  { %1130 = vmatpush.msra.mxu3 %v2269_v25  ;;  %1150 = vmatpush.msra.mxu0 %v1465_v20  ;;  %v1469_v25 = vld [vmem:[#allocation9 + $0x38] sm:$0xff] }
 0x320   :  { %1102 = vmatpush.msrb.mxu2 %v2273_v52 }
 0x321   :  { %1131 = vmatpush.msra.mxu3 %v2276_v26  ;;  %1151 = vmatpush.msra.mxu0 %v1466_v22  ;;  %v1470_v26 = vld [vmem:[#allocation9 + $0x20] sm:$0xff] }
 0x322   :  { %1103 = vmatpush.msrb.mxu2 %v2280_v53 }
 0x323   :  { %1132 = vmatpush.msra.mxu3 %v2283_v27  ;;  %1152 = vmatpush.msra.mxu0 %v1467_v23  ;;  %v1471_v27 = vld [vmem:[#allocation9 + $0x8] sm:$0xff] }
 0x324   :  { %1104 = vmatpush.msrb.mxu2 %v2287_v54 }
 0x325   :  { %1133 = vmatpush.msra.mxu3 %v2290_v28  ;;  %1153 = vmatpush.msra.mxu0 %v1468_v24  ;;  %v2500_v28 = vld [vmem:[#allocation39_spill] sm:$0xff] }
 0x326   :  { %1105 = vmatpush.msrb.mxu2 %v2294_v56  ;;  %v226_v63 = vadd.f32 %v2500_v28, %v2493_v13 }
 0x327   :  { %1134 = vmatpush.msra.mxu3 %v2297_v30  ;;  %1154 = vmatpush.msra.mxu0 %v1469_v25  ;;  %v2501_v30 = vld [vmem:[#allocation30_spill] sm:$0xff] }
 0x328   :  { %1106 = vmatpush.msrb.mxu2 %v2301_v57 }
 0x329   :  { %1135 = vmatpush.msra.mxu3 %v2304_v32  ;;  %1155 = vmatpush.msra.mxu0 %v1470_v26 }
 0x32a   :  { %1107 = vmatpush.msrb.mxu2 %v2308_v58 }
 0x32b   :  { %1136 = vmatpush.msra.mxu3 %v2311_v35  ;;  %1156 = vmatpush.msra.mxu0 %v1471_v27 }
 0x389   :  { %v891_v61 = vpop.f32.mrf.mxu0 }
 0x38a   :  { %v892_v37 = vadd.f32 %v2050_v33, %v891_v61 }
 0x38e   :  { %v811_v42 = vpop.f32.mrf.mxu2  ;;  %v831_v12 = vpop.f32.mrf.mxu3 }
 0x38f   :  { %v834_v31 = vadd.f32 %v811_v42, %v2501_v30  ;;  %v854_v60 = vadd.f32 %v831_v12, %v226_v63 }
 0x391   :  { %v1323_v50 = vmul.f32 -1.442695, %v834_v31  ;;  %v1324_v1 = vmul.f32 -1.442695, %v854_v60 }
 0x393   :  { %1384 = vpow2.f32 %v1323_v50  ;;  %v2393_v50 = vld [vmem:[%s2427_s4] ss:$0 sm:$0xff] }
 0x394   :  { %1386 = vpow2.f32 %v1324_v1 }
 0x399   :  { %v1385_v32 = vpop.eup %1384 }
 0x39a   :  { %v1387_v3 = vpop.eup %1386  ;;  %v838_v6 = vadd.f32 1.0, %v1385_v32 }
 0x39b   :  { %v858_v7 = vadd.f32 1.0, %v1387_v3  ;;  %v2505_v3 = vld [vmem:[#allocation42_spill] sm:$0xff] }
 0x39c   :  { %1388 = vrcp.f32 %v838_v6  ;;  %v850_v39 = vand.u32 2147483648, %v838_v6  ;;  %v848_v29 = vand.u32 2147483647, %v838_v6  ;;  %vm844_vm2 = vweird.f32 %v838_v6 }
 0x39d   :  { %1390 = vrcp.f32 %v858_v7  ;;  %v870_v17 = vand.u32 2147483648, %v858_v7  ;;  %vm864_vm6 = vweird.f32 %v858_v7  ;;  %v868_v18 = vand.u32 2147483647, %v858_v7 }
 0x39e   :  { %v851_v34 = vor.u32 1.1754944e-38, %v850_v39  ;;  %vm849_vm4 = vcmp.eq.f32.partialorder %v848_v29, 8.507059e+37 }
 0x39f   :  { %v871_v22 = vor.u32 1.1754944e-38, %v870_v17  ;;  %vm869_vm8 = vcmp.eq.f32.partialorder %v868_v18, 8.507059e+37 }
 0x3a2   :  { %v1389_v35 = vpop.eup %1388 }
 0x3a3   :  { %v1391_v5 = vpop.eup %1390  ;;  %v840_v38 = vmul.f32 %v1389_v35, %v838_v6  ;;  %vm845_vm1 = vweird.f32 %v1389_v35  ;;  %v270_v6 = vadd.f32 %v2505_v3, %v2053_v41  ;;  %v1243_v3 = vld [vmem:[#allocation12 + $0x60] sm:$0xff] }
 0x3a4   :  { %v860_v62 = vmul.f32 %v1391_v5, %v858_v7  ;;  %vm846_vm3 = vmor %vm844_vm2, %vm845_vm1  ;;  %vm865_vm5 = vweird.f32 %v1391_v5 }
 0x3a5   :  { %v841_v55 = vsub.f32 1.0, %v840_v38  ;;  %vm866_vm7 = vmor %vm864_vm6, %vm865_vm5 }
 0x3a6   :  { %v861_v46 = vsub.f32 1.0, %v860_v62 }
 0x3a7   :  { %v842_v43 = vmul.f32 %v1389_v35, %v841_v55 }
 0x3a8   :  { %v862_v59 = vmul.f32 %v1391_v5, %v861_v46 }
 0x3a9   :  { %v843_v8 = vadd.f32 %v1389_v35, %v842_v43 }
 0x3aa   :  { %v863_v15 = vadd.f32 %v1391_v5, %v862_v59 }
 0x3ab   :  { %v847_v21 = vsel %vm846_vm3, %v1389_v35, %v843_v8 }
 0x3ac   :  { %v852_v44 = vsel %vm849_vm4, %v851_v34, %v847_v21  ;;  %v867_v19 = vsel %vm866_vm7, %v1391_v5, %v863_v15 }
 0x3ad   :  { %v894_v11 = vmul.f32 %v892_v37, %v852_v44  ;;  %v872_v23 = vsel %vm869_vm8, %v871_v22, %v867_v19  ;;  %v2506_v37 = vld [vmem:[#allocation43_spill] sm:$0xff] }
 0x3ae   :  { %v232_v21 = vadd.f32 %v2506_v37, %v2493_v13 }
 0x3af   :  { %v895_v14 = vadd.f32 %v894_v11, %v267_v9  ;;  %v2507_v9 = vld [vmem:[#allocation32_spill] sm:$0xff] }
 0x3b1   :  { %1392 = vtanh.f32 %v895_v14 }
 0x3b7   :  { %v1393_v20 = vpop.eup %1392 }
 0x3b8   :  { %v897_v33 = vsub.f32 %v2322_v4, %v1393_v20 }
 0x3ba   :  { %v898_v24 = vmul.f32 %v897_v33, %v872_v23 }
 0x3bc   :  { %v2366_v25 = vadd.f32 %v1393_v20, %v898_v24 }
 0x3be   :  { %919 = vmatmul.f32.vlgmr.msra.gmra.mxu1 %v2366_v25  ;;  %939 = vmatmul.f32.vlgmr.msra.gmra.mxu2 %v2366_v25 }
 0x3bf   :  { %999 = vmatmul.f32.vlgmr.msrb.gmra.mxu3 %v2366_v25  ;;  %1201 = vmatpush.msra.mxu1 %v2203_v10 }
 0x3c1   :  { %1202 = vmatpush.msra.mxu1 %v2210_v0  ;;  %v2503_v0 = vld [vmem:[#allocation31_spill] sm:$0xff] }
 0x3c3   :  { %1203 = vmatpush.msra.mxu1 %v2217_v16 }
 0x3c5   :  { %1204 = vmatpush.msra.mxu1 %v2224_v36 }
 0x3c7   :  { %1205 = vmatpush.msra.mxu1 %v2231_v40  ;;  %v2504_v40 = vld [vmem:[#allocation41_spill] sm:$0xff] }
 0x3c9   :  { %1206 = vmatpush.msra.mxu1 %v2238_v45  ;;  %v229_v45 = vadd.f32 %v2504_v40, %v2493_v13 }
 0x3cb   :  { %1207 = vmatpush.msra.mxu1 %v2245_v47 }
 0x3cd   :  { %1208 = vmatpush.msra.mxu1 %v2252_v48 }
 0x3cf   :  { %1209 = vmatpush.msra.mxu1 %v2259_v49 }
 0x3d1   :  { %1210 = vmatpush.msra.mxu1 %v2266_v51 }
 0x3d3   :  { %1211 = vmatpush.msra.mxu1 %v2273_v52 }
 0x3d5   :  { %1212 = vmatpush.msra.mxu1 %v2280_v53 }
 0x3d7   :  { %1213 = vmatpush.msra.mxu1 %v2287_v54 }
 0x3d9   :  { %1214 = vmatpush.msra.mxu1 %v2294_v56 }
 0x3db   :  { %1215 = vmatpush.msra.mxu1 %v2301_v57 }
 0x3dd   :  { %1216 = vmatpush.msra.mxu1 %v2308_v58 }
 0x43b   :  { %v920_v10 = vpop.f32.mrf.mxu1 }
 0x43c   :  { %v943_v16 = vadd.f32 %v920_v10, %v2503_v0 }
 0x43e   :  { %v1325_v36 = vmul.f32 -1.442695, %v943_v16 }
 0x440   :  { %1394 = vpow2.f32 %v1325_v36 }
 0x441   :  { %v940_v47 = vpop.f32.mrf.mxu2 }
 0x442   :  { %v963_v48 = vadd.f32 %v940_v47, %v229_v45  ;;  %v1000_v63 = vpop.f32.mrf.mxu3 }
 0x443   :  { %v1001_v1 = vadd.f32 %v2393_v50, %v1000_v63 }
 0x444   :  { %v1326_v49 = vmul.f32 -1.442695, %v963_v48 }
 0x446   :  { %v1395_v51 = vpop.eup %1394  ;;  %1396 = vpow2.f32 %v1326_v49 }
 0x447   :  { %v947_v52 = vadd.f32 1.0, %v1395_v51 }
 0x449   :  { %1398 = vrcp.f32 %v947_v52  ;;  %v959_v4 = vand.u32 2147483648, %v947_v52  ;;  %v957_v27 = vand.u32 2147483647, %v947_v52  ;;  %vm953_vm10 = vweird.f32 %v947_v52 }
 0x44b   :  { %v960_v30 = vor.u32 1.1754944e-38, %v959_v4  ;;  %vm958_vm12 = vcmp.eq.f32.partialorder %v957_v27, 8.507059e+37 }
 0x44c   :  { %v1397_v53 = vpop.eup %1396 }
 0x44d   :  { %v967_v54 = vadd.f32 1.0, %v1397_v53 }
 0x44f   :  { %v1399_v56 = vpop.eup %1398  ;;  %1400 = vrcp.f32 %v967_v54  ;;  %v979_v55 = vand.u32 2147483648, %v967_v54  ;;  %vm973_vm14 = vweird.f32 %v967_v54  ;;  %v977_v39 = vand.u32 2147483647, %v967_v54 }
 0x450   :  { %v949_v57 = vmul.f32 %v1399_v56, %v947_v52  ;;  %vm954_vm9 = vweird.f32 %v1399_v56  ;;  %v2508_v52 = vld [vmem:[#allocation44_spill] sm:$0xff] }
 0x451   :  { %vm955_vm11 = vmor %vm953_vm10, %vm954_vm9  ;;  %v980_v29 = vor.u32 1.1754944e-38, %v979_v55  ;;  %vm978_vm0 = vcmp.eq.f32.partialorder %v977_v39, 8.507059e+37  ;;  %v273_v53 = vadd.f32 %v2508_v52, %v2053_v41  ;;  %v1241_v55 = vld [vmem:[#allocation12 + $0x50] sm:$0xff]  ;;  %v1240_v39 = vld [vmem:[#allocation12 + $0x48] sm:$0xff] }
 0x452   :  { %v950_v58 = vsub.f32 1.0, %v949_v57 }
 0x454   :  { %v951_v26 = vmul.f32 %v1399_v56, %v950_v58 }
 0x455   :  { %v1401_v28 = vpop.eup %1400 }
 0x456   :  { %v969_v42 = vmul.f32 %v1401_v28, %v967_v54  ;;  %v952_v12 = vadd.f32 %v1399_v56, %v951_v26  ;;  %vm974_vm13 = vweird.f32 %v1401_v28 }
 0x457   :  { %vm975_vm15 = vmor %vm973_vm14, %vm974_vm13 }
 0x458   :  { %v970_v31 = vsub.f32 1.0, %v969_v42  ;;  %v956_v60 = vsel %vm955_vm11, %v1399_v56, %v952_v12 }
 0x459   :  { %v961_v32 = vsel %vm958_vm12, %v960_v30, %v956_v60  ;;  %v1246_v60 = vld [vmem:[#allocation12 + $0x78] sm:$0xff] }
 0x45a   :  { %v1003_v7 = vmul.f32 %v1001_v1, %v961_v32  ;;  %v971_v35 = vmul.f32 %v1401_v28, %v970_v31  ;;  %1251 = vmatpush.msra.mxu2 %v1246_v60  ;;  %v1245_v1 = vld [vmem:[#allocation12 + $0x70] sm:$0xff]  ;;  %v1244_v32 = vld [vmem:[#allocation12 + $0x68] sm:$0xff] }
 0x45c   :  { %v1004_v5 = vadd.f32 %v1003_v7, %v270_v6  ;;  %v972_v38 = vadd.f32 %v1401_v28, %v971_v35  ;;  %1252 = vmatpush.msra.mxu2 %v1245_v1  ;;  %v2509_v6 = vld [vmem:[#allocation45_spill] sm:$0xff]  ;;  %v1242_v35 = vld [vmem:[#allocation12 + $0x58] sm:$0xff] }
 0x45d   :  { %v235_v7 = vadd.f32 %v2509_v6, %v2493_v13  ;;  %v1236_v13 = vld [vmem:[#allocation12 + $0x28] sm:$0xff] }
 0x45e   :  { %1402 = vtanh.f32 %v1004_v5  ;;  %v976_v62 = vsel %vm975_vm15, %v1401_v28, %v972_v38  ;;  %1253 = vmatpush.msra.mxu2 %v1244_v32 }
 0x45f   :  { %v981_v8 = vsel %vm978_vm0, %v980_v29, %v976_v62  ;;  %v1239_v62 = vld [vmem:[#allocation12 + $0x40] sm:$0xff]  ;;  %v1238_v29 = vld [vmem:[#allocation12 + $0x38] sm:$0xff] }
 0x460   :  { %1254 = vmatpush.msra.mxu2 %v1243_v3 }
 0x462   :  { %1255 = vmatpush.msra.mxu2 %v1242_v35 }
 0x464   :  { %v1403_v43 = vpop.eup %1402  ;;  %1256 = vmatpush.msra.mxu2 %v1241_v55 }
 0x465   :  { %v1006_v61 = vsub.f32 %v2366_v25, %v1403_v43 }
 0x466   :  { %1257 = vmatpush.msra.mxu2 %v1240_v39 }
 0x467   :  { %v1007_v34 = vmul.f32 %v1006_v61, %v981_v8  ;;  %v2510_v8 = vld [vmem:[#allocation33_spill] sm:$0xff] }
 0x468   :  { %1258 = vmatpush.msra.mxu2 %v1239_v62 }
 0x469   :  { %v1008_v46 = vadd.f32 %v1403_v43, %v1007_v34 }
 0x46a   :  { %1259 = vmatpush.msra.mxu2 %v1238_v29 }
 0x46b   :  { %1028 = vmatmul.f32.vlgmr.msrb.gmra.mxu0 %v1008_v46  ;;  %1048 = vmatmul.f32.vlgmr.msrb.gmra.mxu1 %v1008_v46 }
 0x46c   :  { %1108 = vmatmul.f32.vlgmr.msrb.gmra.mxu2 %v1008_v46 }
 0x4e8   :  { %v1029_v44 = vpop.f32.mrf.mxu0  ;;  %v1049_v2 = vpop.f32.mrf.mxu1 }
 0x4e9   :  { %v1052_v11 = vadd.f32 %v1029_v44, %v2507_v9  ;;  %v1072_v59 = vadd.f32 %v1049_v2, %v232_v21  ;;  %v1235_v21 = vld [vmem:[#allocation12 + $0x20] sm:$0xff]  ;;  %v1234_v44 = vld [vmem:[#allocation12 + $0x18] sm:$0xff]  ;;  %v1233_v9 = vld [vmem:[#allocation12 + $0x10] sm:$0xff] }
 0x4eb   :  { %v1327_v14 = vmul.f32 -1.442695, %v1052_v11  ;;  %v1328_v15 = vmul.f32 -1.442695, %v1072_v59 }
 0x4ed   :  { %1404 = vpow2.f32 %v1327_v14  ;;  %v1232_v14 = vld [vmem:[#allocation12 + $0x8] sm:$0xff] }
 0x4ee   :  { %1406 = vpow2.f32 %v1328_v15 }
 0x4ef   :  { %v1109_v36 = vpop.f32.mrf.mxu2 }
 0x4f0   :  { %v1110_v49 = vadd.f32 %v2393_v50, %v1109_v36 }
 0x4f3   :  { %v1405_v17 = vpop.eup %1404 }
 0x4f4   :  { %v1407_v18 = vpop.eup %1406  ;;  %v1056_v19 = vadd.f32 1.0, %v1405_v17  ;;  %v1231_v17 = vld [vmem:[#allocation12] sm:$0xff] }
 0x4f5   :  { %v1076_v20 = vadd.f32 1.0, %v1407_v18 }
 0x4f6   :  { %1408 = vrcp.f32 %v1056_v19  ;;  %v1068_v10 = vand.u32 2147483648, %v1056_v19  ;;  %v1066_v16 = vand.u32 2147483647, %v1056_v19  ;;  %vm1062_vm2 = vweird.f32 %v1056_v19 }
 0x4f7   :  { %1410 = vrcp.f32 %v1076_v20  ;;  %v1088_v4 = vand.u32 2147483648, %v1076_v20  ;;  %vm1082_vm6 = vweird.f32 %v1076_v20  ;;  %v1086_v26 = vand.u32 2147483647, %v1076_v20 }
 0x4f8   :  { %v1069_v47 = vor.u32 1.1754944e-38, %v1068_v10  ;;  %vm1067_vm4 = vcmp.eq.f32.partialorder %v1066_v16, 8.507059e+37 }
 0x4f9   :  { %v1089_v63 = vor.u32 1.1754944e-38, %v1088_v4  ;;  %vm1087_vm8 = vcmp.eq.f32.partialorder %v1086_v26, 8.507059e+37 }
 0x4fc   :  { %v1409_v22 = vpop.eup %1408 }
 0x4fd   :  { %v1411_v33 = vpop.eup %1410  ;;  %v1058_v23 = vmul.f32 %v1409_v22, %v1056_v19  ;;  %vm1063_vm1 = vweird.f32 %v1409_v22 }
 0x4fe   :  { %v1078_v25 = vmul.f32 %v1411_v33, %v1076_v20  ;;  %vm1064_vm3 = vmor %vm1062_vm2, %vm1063_vm1  ;;  %vm1083_vm5 = vweird.f32 %v1411_v33 }
 0x4ff   :  { %v1059_v24 = vsub.f32 1.0, %v1058_v23  ;;  %vm1084_vm7 = vmor %vm1082_vm6, %vm1083_vm5 }
 0x500   :  { %v1079_v45 = vsub.f32 1.0, %v1078_v25 }
 0x501   :  { %v1060_v0 = vmul.f32 %v1409_v22, %v1059_v24 }
 0x502   :  { %v1080_v56 = vmul.f32 %v1411_v33, %v1079_v45 }
 0x503   :  { %v1061_v40 = vadd.f32 %v1409_v22, %v1060_v0 }
 0x504   :  { %v1081_v58 = vadd.f32 %v1411_v33, %v1080_v56 }
 0x505   :  { %v1065_v48 = vsel %vm1064_vm3, %v1409_v22, %v1061_v40 }
 0x506   :  { %v1070_v51 = vsel %vm1067_vm4, %v1069_v47, %v1065_v48  ;;  %v1085_v27 = vsel %vm1084_vm7, %v1411_v33, %v1081_v58  ;;  %v2511_v48 = vld [vmem:[#allocation46_spill] sm:$0xff] }
 0x507   :  { %v1112_v54 = vmul.f32 %v1110_v49, %v1070_v51  ;;  %v1090_v12 = vsel %vm1087_vm8, %v1089_v63, %v1085_v27  ;;  %v276_v49 = vadd.f32 %v2511_v48, %v2053_v41  ;;  %v1343_v41 = vld [vmem:[%s2429_s6] ss:$0 sm:$0xff] }
 0x509   :  { %v1113_v57 = vadd.f32 %v1112_v54, %v273_v53 }
 0x50b   :  { %1412 = vtanh.f32 %v1113_v57 }
 0x511   :  { %v1413_v28 = vpop.eup %1412 }
 0x512   :  { %v1115_v42 = vsub.f32 %v1008_v46, %v1413_v28  ;;  %v1237_v46 = vld [vmem:[#allocation12 + $0x30] sm:$0xff] }
 0x513   :  { %1260 = vmatpush.msra.mxu2 %v1237_v46 }
 0x514   :  { %v1116_v30 = vmul.f32 %v1115_v42, %v1090_v12 }
 0x515   :  { %1261 = vmatpush.msra.mxu2 %v1236_v13 }
 0x516   :  { %v2405_v31 = vadd.f32 %v1413_v28, %v1116_v30 }
 0x517   :  { %1262 = vmatpush.msra.mxu2 %v1235_v21 }
 0x518   :  { %1137 = vmatmul.f32.vlgmr.msra.gmra.mxu3 %v2405_v31  ;;  %1157 = vmatmul.f32.vlgmr.msra.gmra.mxu0 %v2405_v31 }
 0x519   :  { %1217 = vmatmul.f32.vlgmr.msra.gmra.mxu1 %v2405_v31  ;;  %1263 = vmatpush.msra.mxu2 %v1234_v44 }
 0x51b   :  { %1264 = vmatpush.msra.mxu2 %v1233_v9 }
 0x51d   :  { %1265 = vmatpush.msra.mxu2 %v1232_v14 }
 0x51f   :  { %1266 = vmatpush.msra.mxu2 %v1231_v17 }
 0x595   :  { %v1158_v5 = vpop.f32.mrf.mxu0 }
 0x596   :  { %v1181_v38 = vadd.f32 %v1158_v5, %v235_v7  ;;  %v1218_v10 = vpop.f32.mrf.mxu1 }
 0x597   :  { %v1219_v40 = vadd.f32 %v2393_v50, %v1218_v10 }
 0x598   :  { %v1330_v43 = vmul.f32 -1.442695, %v1181_v38 }
 0x59a   :  { %1414 = vpow2.f32 %v1330_v43 }
 0x59b   :  { %v1138_v61 = vpop.f32.mrf.mxu3 }
 0x59c   :  { %v1161_v34 = vadd.f32 %v1138_v61, %v2510_v8 }
 0x59e   :  { %v1329_v37 = vmul.f32 -1.442695, %v1161_v34 }
 0x5a0   :  { %1416 = vpow2.f32 %v1329_v37  ;;  %v1415_v2 = vpop.eup %1414 }
 0x5a1   :  { %v1185_v59 = vadd.f32 1.0, %v1415_v2 }
 0x5a3   :  { %v1197_v56 = vand.u32 2147483648, %v1185_v59  ;;  %vm1191_vm14 = vweird.f32 %v1185_v59  ;;  %v1195_v57 = vand.u32 2147483647, %v1185_v59 }
 0x5a5   :  { %v1198_v26 = vor.u32 1.1754944e-38, %v1197_v56  ;;  %vm1196_vm0 = vcmp.eq.f32.partialorder %v1195_v57, 8.507059e+37 }
 0x5a6   :  { %v1417_v11 = vpop.eup %1416 }
 0x5a7   :  { %v1165_v15 = vadd.f32 1.0, %v1417_v11 }
 0x5a9   :  { %1418 = vrcp.f32 %v1165_v15  ;;  %v1177_v23 = vand.u32 2147483648, %v1165_v15  ;;  %v1175_v25 = vand.u32 2147483647, %v1165_v15  ;;  %vm1171_vm10 = vweird.f32 %v1165_v15 }
 0x5aa   :  { %1420 = vrcp.f32 %v1185_v59 }
 0x5ab   :  { %v1178_v36 = vor.u32 1.1754944e-38, %v1177_v23  ;;  %vm1176_vm12 = vcmp.eq.f32.partialorder %v1175_v25, 8.507059e+37 }
 0x5af   :  { %v1419_v18 = vpop.eup %1418 }
 0x5b0   :  { %v1421_v19 = vpop.eup %1420  ;;  %v1167_v20 = vmul.f32 %v1419_v18, %v1165_v15  ;;  %vm1172_vm9 = vweird.f32 %v1419_v18 }
 0x5b1   :  { %v1187_v33 = vmul.f32 %v1421_v19, %v1185_v59  ;;  %vm1173_vm11 = vmor %vm1171_vm10, %vm1172_vm9  ;;  %vm1192_vm13 = vweird.f32 %v1421_v19 }
 0x5b2   :  { %v1168_v22 = vsub.f32 1.0, %v1167_v20  ;;  %vm1193_vm15 = vmor %vm1191_vm14, %vm1192_vm13 }
 0x5b3   :  { %v1188_v16 = vsub.f32 1.0, %v1187_v33 }
 0x5b4   :  { %v1169_v24 = vmul.f32 %v1419_v18, %v1168_v22 }
 0x5b5   :  { %v1189_v52 = vmul.f32 %v1421_v19, %v1188_v16 }
 0x5b6   :  { %v1170_v0 = vadd.f32 %v1419_v18, %v1169_v24 }
 0x5b7   :  { %v1190_v54 = vadd.f32 %v1421_v19, %v1189_v52 }
 0x5b8   :  { %v1174_v45 = vsel %vm1173_vm11, %v1419_v18, %v1170_v0 }
 0x5b9   :  { %v1179_v47 = vsel %vm1176_vm12, %v1178_v36, %v1174_v45  ;;  %v1194_v58 = vsel %vm1193_vm15, %v1421_v19, %v1190_v54 }
 0x5ba   :  { %v1221_v51 = vmul.f32 %v1219_v40, %v1179_v47  ;;  %v1199_v27 = vsel %vm1196_vm0, %v1198_v26, %v1194_v58 }
 0x5bc   :  { %v1222_v53 = vadd.f32 %v1221_v51, %v276_v49 }
 0x5be   :  { %1422 = vtanh.f32 %v1222_v53 }
 0x5c4   :  { %v1423_v4 = vpop.eup %1422 }
 0x5c5   :  { %v1224_v50 = vsub.f32 %v2405_v31, %v1423_v4 }
 0x5c7   :  { %v1225_v28 = vmul.f32 %v1224_v50, %v1199_v27 }
 0x5c9   :  { %v1226_v63 = vadd.f32 %v1423_v4, %v1225_v28 }
 0x5cb   :  { %1267 = vmatmul.f32.vlgmr.msra.gmra.mxu2 %v1226_v63 }
 0x64e   :  { %v1268_v42 = vpop.f32.mrf.mxu2 }
 0x64f   :  { %v1269_v12 = vadd.f32 %v1343_v41, %v1268_v42 }
 0x651   :  { %1271 = vst [vmem:[#allocation13] sm:$0xff] %v1269_v12 }
 0x652   :  { %1282 = dma.vmem_to_hbm [thread:$0]  %s1278_s8, 128, %s1280_s11, [#allocation6]  }
 0x653   :  { %1623 = dma.done.wait [#allocation6], 128  }
 0x654   :  { %1624 = vsyncadd [#allocation6], 4294967168 }
 0x655   :  { %1287 = vsyncpa [#allocation5], 1 }
 0x656   :  { %1288 = vsyncpa [#allocation8], 1 }
 0x657   :  { %1289 = vsyncpa [#allocation11], 1 }
 0x658   :  { %1290 = vsyncpa [#allocation6], 1 }

</bundles_post_ra>
